<compile_context>
chip_gen: v7x
topology: tpu7x:2x2x1
jax: 0.10.0
libtpu: 0.0.40
codegen_flags: <defaults>
</compile_context>

<pallas_src>
import jax
import jax.numpy as jnp
from jax.experimental import pallas as pl
from jax.experimental.pallas import tpu as pltpu


def _round_up(x, mult):
    return ((x + mult - 1) // mult) * mult


def _vmem():
    return pl.BlockSpec(memory_space=pltpu.MemorySpace.VMEM)


def _smem():
    return pl.BlockSpec(memory_space=pltpu.MemorySpace.SMEM)


# ---------------------------------------------------------------------------
# In-kernel helpers (plain functions, traced inside the kernel body)
# ---------------------------------------------------------------------------

def _mlp_l2norm(x, w1, b1, w2, b2):
    """L2norm_rows( relu(x @ W1 + b1) @ W2 + b2 ), F.normalize(eps=1e-12).

    bf16 MXU operands, f32 accumulation; the normalization is f32 and uses
    rsqrt so the sqrt/divide lands on the EUP slot.
    """
    bf16 = jnp.bfloat16
    f32 = jnp.float32
    h = jnp.dot(x.astype(bf16), w1.astype(bf16), preferred_element_type=f32) + b1
    h = jnp.maximum(h, 0.0)
    y = jnp.dot(h.astype(bf16), w2.astype(bf16), preferred_element_type=f32) + b2
    ss = jnp.sum(y * y, axis=-1, keepdims=True)
    return y * jax.lax.rsqrt(jnp.maximum(ss, 1e-24))


def _linear(x, w, b):
    bf16 = jnp.bfloat16
    return jnp.dot(x.astype(bf16), w.astype(bf16),
                   preferred_element_type=jnp.float32) + b


def _moco_logits(q, k, queue_ke, out_width):
    """[pos | neg | 0-pad] slab.  queue is stored [K, E]; neg = q @ queue.T."""
    bf16 = jnp.bfloat16
    f32 = jnp.float32
    pos = jnp.sum(q * k, axis=-1, keepdims=True)                       # [N, 1]
    neg = jnp.dot(q.astype(bf16), queue_ke.astype(bf16).T,
                  preferred_element_type=f32)                          # [N, K]
    parts = [pos, neg]
    pad = out_width - 1 - queue_ke.shape[0]
    if pad:
        parts.append(jnp.zeros((q.shape[0], pad), f32))
    return jnp.concatenate(parts, axis=-1)


# ---------------------------------------------------------------------------
# Fused training-head kernel
# ---------------------------------------------------------------------------

def _moco_head_train_kernel(
        # scalar inputs (SMEM)
        m_ref, ptr_ref,
        # encoder features
        v_feat_ref, t_feat_ref,
        # query-path MLP heads (w1, b1, w2, b2)
        vq_w1_ref, vq_b1_ref, vq_w2_ref, vq_b2_ref,
        tq_w1_ref, tq_b1_ref, tq_w2_ref, tq_b2_ref,
        # key-path MLP heads (pre momentum update)
        vk_w1_ref, vk_b1_ref, vk_w2_ref, vk_b2_ref,
        tk_w1_ref, tk_b1_ref, tk_w2_ref, tk_b2_ref,
        # embed layers
        ve_w_ref, ve_b_ref, te_w_ref, te_b_ref,
        # queues, stored [K, E]
        v_queue_ref, t_queue_ref,
        # ---- outputs ----
        emb_ref,             # [N, round_up(6E,128)] = v_emb|t_emb|v_q|t_q|v_k|t_k|0
        v_logits_ref,        # [N, round_up(1+K,128)] = pos | neg | 0
        t_logits_ref,
        vk_w1_o, vk_b1_o, vk_w2_o, vk_b2_o,
        tk_w1_o, tk_b1_o, tk_w2_o, tk_b2_o,
        v_queue_o, t_queue_o,
):
    f32 = jnp.float32
    n = v_feat_ref.shape[0]
    e = vq_w2_ref.shape[1]
    k_len = v_queue_ref.shape[0]

    m = m_ref[0]
    one_minus_m = 1.0 - m

    v_feat = v_feat_ref[...]
    t_feat = t_feat_ref[...]

    # ---- query path: fc_q MLP (+ L2 norm) and plain embed layers ----
    v_embed_q = _mlp_l2norm(v_feat, vq_w1_ref[...], vq_b1_ref[...],
                            vq_w2_ref[...], vq_b2_ref[...])
    t_embed_q = _mlp_l2norm(t_feat, tq_w1_ref[...], tq_b1_ref[...],
                            tq_w2_ref[...], tq_b2_ref[...])
    v_embed = _linear(v_feat, ve_w_ref[...], ve_b_ref[...])
    t_embed = _linear(t_feat, te_w_ref[...], te_b_ref[...])

    # ---- momentum update of the fc_k heads: computed in VMEM, used below ----
    vk_w1 = vk_w1_ref[...] * m + vq_w1_ref[...] * one_minus_m
    vk_b1 = vk_b1_ref[...] * m + vq_b1_ref[...] * one_minus_m
    vk_w2 = vk_w2_ref[...] * m + vq_w2_ref[...] * one_minus_m
    vk_b2 = vk_b2_ref[...] * m + vq_b2_ref[...] * one_minus_m
    tk_w1 = tk_w1_ref[...] * m + tq_w1_ref[...] * one_minus_m
    tk_b1 = tk_b1_ref[...] * m + tq_b1_ref[...] * one_minus_m
    tk_w2 = tk_w2_ref[...] * m + tq_w2_ref[...] * one_minus_m
    tk_b2 = tk_b2_ref[...] * m + tq_b2_ref[...] * one_minus_m
    vk_w1_o[...] = vk_w1
    vk_b1_o[...] = vk_b1
    vk_w2_o[...] = vk_w2
    vk_b2_o[...] = vk_b2
    tk_w1_o[...] = tk_w1
    tk_b1_o[...] = tk_b1
    tk_w2_o[...] = tk_w2
    tk_b2_o[...] = tk_b2

    # ---- key path (no-grad in torch), with the freshly updated fc_k params ----
    # TODO(synk): torch feeds the *key encoders'* (v_encoder_k/t_encoder_k)
    # outputs here; those encoders are external modules, so the query-encoder
    # features are reused.
    v_embed_k = _mlp_l2norm(v_feat, vk_w1, vk_b1, vk_w2, vk_b2)
    t_embed_k = _mlp_l2norm(t_feat, tk_w1, tk_b1, tk_w2, tk_b2)

    # ---- lane-dense embedding slab ----
    emb_parts = [v_embed, t_embed, v_embed_q, t_embed_q, v_embed_k, t_embed_k]
    emb_pad = emb_ref.shape[1] - 6 * e
    if emb_pad:
        emb_parts.append(jnp.zeros((n, emb_pad), f32))
    emb_ref[...] = jnp.concatenate(emb_parts, axis=-1)

    # ---- MoCo logits (pos in column 0, negatives from the pre-update queues) --
    # TODO(synk): torch selects negatives by id (nonzero/unique -> neg_idx,
    # dynamic shape); with a fresh id_queue (all -1) and non-negative labels
    # neg_idx == arange(K), so using the full queue is exact here.
    v_logits_ref[...] = _moco_logits(v_embed_q, t_embed_k, t_queue_ref[...],
                                     v_logits_ref.shape[1])
    t_logits_ref[...] = _moco_logits(t_embed_q, v_embed_k, v_queue_ref[...],
                                     t_logits_ref.shape[1])

    # ---- dequeue & enqueue: copy queue, overwrite rows [ptr, ptr+N) ----
    ptr = jnp.minimum(ptr_ref[0], k_len - n)   # K % N == 0 -> never actually clips
    ptr = pl.multiple_of(ptr, n)
    v_queue_o[...] = v_queue_ref[...]
    t_queue_o[...] = t_queue_ref[...]
    v_queue_o[pl.ds(ptr, n), :] = v_embed_k
    t_queue_o[pl.ds(ptr, n), :] = t_embed_k


# ---------------------------------------------------------------------------
# Eval kernel: both embed layers in one launch
# ---------------------------------------------------------------------------

def _embed_eval_kernel(v_feat_ref, t_feat_ref, vw_ref, vb_ref, tw_ref, tb_ref,
                       v_out_ref, t_out_ref):
    v_out_ref[...] = _linear(v_feat_ref[...], vw_ref[...], vb_ref[...])
    t_out_ref[...] = _linear(t_feat_ref[...], tw_ref[...], tb_ref[...])


# ---------------------------------------------------------------------------
# Python wrappers
# ---------------------------------------------------------------------------

def moco_head_forward_train(params, buffers, v_feat, t_feat, label, m):
    """Mirror of MoCoHead.forward (training, fc=True), given encoder outputs."""
    n = v_feat.shape[0]
    e = params["v_fc_q"][2].shape[1]
    k_len = buffers["v_queue"].shape[0]          # queues stored [K, E]
    assert k_len % n == 0, "MoCo requires K % batch_size == 0"

    emb_w = _round_up(6 * e, 128)
    log_w = _round_up(1 + k_len, 128)
    f32 = jnp.float32

    m_arr = jnp.full((1,), m, dtype=f32)
    ptr_arr = buffers["queue_ptr"].astype(jnp.int32)

    inputs = (
        m_arr, ptr_arr, v_feat, t_feat,
        *params["v_fc_q"], *params["t_fc_q"],
        *params["v_fc_k"], *params["t_fc_k"],
        *params["v_embed_layer"], *params["t_embed_layer"],
        buffers["v_queue"], buffers["t_queue"],
    )

    out_shape = (
        jax.ShapeDtypeStruct((n, emb_w), f32),
        jax.ShapeDtypeStruct((n, log_w), f32),
        jax.ShapeDtypeStruct((n, log_w), f32),
        *[jax.ShapeDtypeStruct(p.shape, f32) for p in params["v_fc_k"]],
        *[jax.ShapeDtypeStruct(p.shape, f32) for p in params["t_fc_k"]],
        jax.ShapeDtypeStruct((k_len, e), f32),
        jax.ShapeDtypeStruct((k_len, e), f32),
    )

    in_specs = [_smem(), _smem()] + [_vmem() for _ in range(len(inputs) - 2)]
    out_specs = tuple(_vmem() for _ in out_shape)

    outs = pl.pallas_call(
        _moco_head_train_kernel,
        out_shape=out_shape,
        in_specs=in_specs,
        out_specs=out_specs,
    )(*inputs)

    (emb_slab, v_logits, t_logits,
     vk_w1, vk_b1, vk_w2, vk_b2, tk_w1, tk_b1, tk_w2, tk_b2,
     new_v_queue, new_t_queue) = outs

    v_embed = emb_slab[:, 0 * e:1 * e]
    t_embed = emb_slab[:, 1 * e:2 * e]
    v_embed_q = emb_slab[:, 2 * e:3 * e]
    t_embed_q = emb_slab[:, 3 * e:4 * e]
    v_embed_k = emb_slab[:, 4 * e:5 * e]
    t_embed_k = emb_slab[:, 5 * e:6 * e]

    v_pos, v_neg = v_logits[:, :1], v_logits[:, 1:1 + k_len]
    t_pos, t_neg = t_logits[:, :1], t_logits[:, 1:1 + k_len]

    # id-queue bookkeeping + pointer advance (tiny int arrays; plain JAX).
    ptr = buffers["queue_ptr"][0]
    new_id_queue = jax.lax.dynamic_update_slice(
        buffers["id_queue"], label.reshape(1, n).astype(jnp.int32), (0, ptr))
    new_ptr = jnp.remainder(ptr + n, k_len).reshape(1).astype(jnp.int32)

    new_params = dict(params,
                      v_fc_k=(vk_w1, vk_b1, vk_w2, vk_b2),
                      t_fc_k=(tk_w1, tk_b1, tk_w2, tk_b2))
    new_buffers = {
        "v_queue": new_v_queue, "t_queue": new_t_queue,
        "id_queue": new_id_queue, "queue_ptr": new_ptr,
    }

    # TODO(synk): loss_evaluator (make_loss_evaluator) is not defined in the
    # provided module source; logits/embeddings are returned instead.
    outputs = {
        "v_embed": v_embed, "t_embed": t_embed,
        "v_embed_q": v_embed_q, "t_embed_q": t_embed_q,
        "v_embed_k": v_embed_k, "t_embed_k": t_embed_k,
        "v_pos": v_pos, "v_neg": v_neg, "t_pos": t_pos, "t_neg": t_neg,
        "v_logits": v_logits[:, :1 + k_len],
        "t_logits": t_logits[:, :1 + k_len],
    }
    return outputs, new_params, new_buffers


def moco_head_forward_eval(params, v_feat, t_feat):
    """Eval branch: just the two embed layers, fused into one launch."""
    n = v_feat.shape[0]
    e = params["v_embed_layer"][0].shape[1]
    f32 = jnp.float32
    v_e, t_e = pl.pallas_call(
        _embed_eval_kernel,
        out_shape=(jax.ShapeDtypeStruct((n, e), f32),
                   jax.ShapeDtypeStruct((n, e), f32)),
        in_specs=[_vmem()] * 6,
        out_specs=(_vmem(), _vmem()),
    )(v_feat, t_feat, *params["v_embed_layer"], *params["t_embed_layer"])
    return [v_e, t_e]


# ---------------------------------------------------------------------------
# Deterministic parameter initialization (matches shapes in __init__)
# ---------------------------------------------------------------------------

def _kaiming_linear(key, fan_in, fan_out):
    """nn.Linear (kaiming_normal_, mode='fan_out'); W stored [in, out], b [1, out]."""
    kw, kb = jax.random.split(key)
    std = (2.0 / fan_out) ** 0.5
    w = std * jax.random.normal(kw, (fan_in, fan_out), dtype=jnp.float32)
    bound = 1.0 / (fan_in ** 0.5)
    b = jax.random.uniform(kb, (1, fan_out), jnp.float32, -bound, bound)
    return w, b


def _mlp(key, c_in, e):
    k1, k2 = jax.random.split(key)
    w1, b1 = _kaiming_linear(k1, c_in, e)
    w2, b2 = _kaiming_linear(k2, e, e)
    return (w1, b1, w2, b2)


def init_moco_head(key, cv, ct, embed_size, K):
    keys = jax.random.split(key, 6)
    v_fc_q = _mlp(keys[0], cv, embed_size)
    t_fc_q = _mlp(keys[1], ct, embed_size)
    params = {
        "v_fc_q": v_fc_q,
        "t_fc_q": t_fc_q,
        "v_fc_k": tuple(jnp.array(p) for p in v_fc_q),   # deepcopy in torch
        "t_fc_k": tuple(jnp.array(p) for p in t_fc_q),
        "v_embed_layer": _kaiming_linear(keys[2], cv, embed_size),
        "t_embed_layer": _kaiming_linear(keys[3], ct, embed_size),
    }
    # Queues stored [K, E] (transpose of the torch [E, K] buffer); columns of the
    # torch buffer == rows here. Normalized per entry like F.normalize(dim=0).
    t_queue = jax.random.uniform(keys[4], (K, embed_size), jnp.float32)
    v_queue = jax.random.uniform(keys[5], (K, embed_size), jnp.float32)
    t_queue = t_queue * jax.lax.rsqrt(
        jnp.maximum(jnp.sum(t_queue * t_queue, axis=1, keepdims=True), 1e-24))
    v_queue = v_queue * jax.lax.rsqrt(
        jnp.maximum(jnp.sum(v_queue * v_queue, axis=1, keepdims=True), 1e-24))
    buffers = {
        "t_queue": t_queue,
        "v_queue": v_queue,
        "id_queue": -jnp.ones((1, K), dtype=jnp.int32),
        "queue_ptr": jnp.zeros((1,), dtype=jnp.int32),
    }
    return params, buffers


# ---------------------------------------------------------------------------
# Demo
# ---------------------------------------------------------------------------

if __name__ == "__main__":
    N = 8            # batch
    CV = 48          # visual_model.out_channels
    CT = 40          # textual_model.out_channels
    EMBED = 32       # cfg.MODEL.EMBEDDING.FEATURE_SIZE
    K = 64           # cfg.MODEL.MOCO.K  (K % N == 0)
    M = 0.999        # cfg.MODEL.MOCO.M

    root = jax.random.PRNGKey(0)
    k_init, k_v, k_t = jax.random.split(root, 3)

    params, buffers = init_moco_head(k_init, CV, CT, EMBED, K)

    # Encoder outputs (the encoders themselves are external modules).
    v_feat = jax.random.normal(k_v, (N, CV), dtype=jnp.float32)
    t_feat = jax.random.normal(k_t, (N, CT), dtype=jnp.float32)
    label = jnp.arange(N, dtype=jnp.int32)

    train_step = jax.jit(moco_head_forward_train)
    outs, new_params, new_buffers = train_step(
        params, buffers, v_feat, t_feat, label, M)
    v_e, t_e = moco_head_forward_eval(params, v_feat, t_feat)

    jax.block_until_ready((outs, new_params, new_buffers, v_e, t_e))

    # ---- sanity checks ----
    assert outs["v_pos"].shape == (N, 1)
    assert outs["v_neg"].shape == (N, K)
    assert outs["t_pos"].shape == (N, 1)
    assert outs["t_neg"].shape == (N, K)
    assert v_e.shape == (N, EMBED) and t_e.shape == (N, EMBED)

    # q/k embeddings are L2-normalized along dim=1 (normalization done in f32).
    assert jnp.allclose(jnp.sum(outs["v_embed_q"] ** 2, axis=1), 1.0, atol=1e-4)
    assert jnp.allclose(jnp.sum(outs["t_embed_k"] ** 2, axis=1), 1.0, atol=1e-4)

    # momentum update: param_k = m * param_k + (1 - m) * param_q
    ref_w1 = (params["v_fc_k"][0] * jnp.float32(M)
              + params["v_fc_q"][0] * (1.0 - jnp.float32(M)))
    assert jnp.allclose(new_params["v_fc_k"][0], ref_w1, atol=1e-6)

    # enqueue: rows [0, N) of the queues (ptr was 0) now hold the key
    # embeddings; everything else is untouched.
    assert jnp.allclose(new_buffers["t_queue"][:N], outs["t_embed_k"], atol=1e-6)
    assert jnp.allclose(new_buffers["v_queue"][:N], outs["v_embed_k"], atol=1e-6)
    assert bool(jnp.all(new_buffers["t_queue"][N:] == buffers["t_queue"][N:]))
    assert int(new_buffers["queue_ptr"][0]) == N

    # pos logit == rowwise <q, k>.
    assert jnp.allclose(outs["v_pos"][:, 0],
                        jnp.sum(outs["v_embed_q"] * outs["t_embed_k"], axis=1),
                        atol=1e-4)

    # loose cross-check of neg logits vs. a plain-jnp reference with the same
    # bf16-operand / f32-accumulate matmul.
    ref_v_neg = jnp.dot(outs["v_embed_q"].astype(jnp.bfloat16),
                        buffers["t_queue"].astype(jnp.bfloat16).T,
                        preferred_element_type=jnp.float32)
    assert jnp.allclose(outs["v_neg"], ref_v_neg, atol=5e-2, rtol=5e-2)

    # eval embed layer cross-check (same bf16/f32 scheme).
    ref_v_e = jnp.dot(v_feat.astype(jnp.bfloat16),
                      params["v_embed_layer"][0].astype(jnp.bfloat16),
                      preferred_element_type=jnp.float32) + params["v_embed_layer"][1]
    assert jnp.allclose(v_e, ref_v_e, atol=1e-2, rtol=1e-2)

    print("KERNEL_OK")
</pallas_src>

<mosaic_0001>
module attributes {stable_mosaic.version = 11 : i64} {
  func.func @_moco_head_train_kernel(%arg0: memref<1xf32, #tpu.memory_space<smem>>, %arg1: memref<1xi32, #tpu.memory_space<smem>>, %arg2: memref<8x48xf32, #tpu.memory_space<vmem>>, %arg3: memref<8x40xf32, #tpu.memory_space<vmem>>, %arg4: memref<48x32xf32, #tpu.memory_space<vmem>>, %arg5: memref<1x32xf32, #tpu.memory_space<vmem>>, %arg6: memref<32x32xf32, #tpu.memory_space<vmem>>, %arg7: memref<1x32xf32, #tpu.memory_space<vmem>>, %arg8: memref<40x32xf32, #tpu.memory_space<vmem>>, %arg9: memref<1x32xf32, #tpu.memory_space<vmem>>, %arg10: memref<32x32xf32, #tpu.memory_space<vmem>>, %arg11: memref<1x32xf32, #tpu.memory_space<vmem>>, %arg12: memref<48x32xf32, #tpu.memory_space<vmem>>, %arg13: memref<1x32xf32, #tpu.memory_space<vmem>>, %arg14: memref<32x32xf32, #tpu.memory_space<vmem>>, %arg15: memref<1x32xf32, #tpu.memory_space<vmem>>, %arg16: memref<40x32xf32, #tpu.memory_space<vmem>>, %arg17: memref<1x32xf32, #tpu.memory_space<vmem>>, %arg18: memref<32x32xf32, #tpu.memory_space<vmem>>, %arg19: memref<1x32xf32, #tpu.memory_space<vmem>>, %arg20: memref<48x32xf32, #tpu.memory_space<vmem>>, %arg21: memref<1x32xf32, #tpu.memory_space<vmem>>, %arg22: memref<40x32xf32, #tpu.memory_space<vmem>>, %arg23: memref<1x32xf32, #tpu.memory_space<vmem>>, %arg24: memref<64x32xf32, #tpu.memory_space<vmem>>, %arg25: memref<64x32xf32, #tpu.memory_space<vmem>>, %arg26: memref<8x256xf32, #tpu.memory_space<vmem>>, %arg27: memref<8x128xf32, #tpu.memory_space<vmem>>, %arg28: memref<8x128xf32, #tpu.memory_space<vmem>>, %arg29: memref<48x32xf32, #tpu.memory_space<vmem>>, %arg30: memref<1x32xf32, #tpu.memory_space<vmem>>, %arg31: memref<32x32xf32, #tpu.memory_space<vmem>>, %arg32: memref<1x32xf32, #tpu.memory_space<vmem>>, %arg33: memref<40x32xf32, #tpu.memory_space<vmem>>, %arg34: memref<1x32xf32, #tpu.memory_space<vmem>>, %arg35: memref<32x32xf32, #tpu.memory_space<vmem>>, %arg36: memref<1x32xf32, #tpu.memory_space<vmem>>, %arg37: memref<64x32xf32, #tpu.memory_space<vmem>>, %arg38: memref<64x32xf32, #tpu.memory_space<vmem>>) attributes {dimension_semantics = [], scalar_prefetch = 0 : i64, scratch_operands = 0 : i64, tpu.core_type = #tpu.core_type<tc>} {
    %c0 = arith.constant 0 : index
    %0 = memref.load %arg0[%c0] : memref<1xf32, #tpu.memory_space<smem>>
    %cst = arith.constant 1.000000e+00 : f32
    %1 = arith.subf %cst, %0 : f32
    %c0_0 = arith.constant 0 : index
    %c0_1 = arith.constant 0 : index
    %2 = vector.load %arg2[%c0_0, %c0_1] : memref<8x48xf32, #tpu.memory_space<vmem>>, vector<8x48xf32>
    %c0_2 = arith.constant 0 : index
    %c0_3 = arith.constant 0 : index
    %3 = vector.load %arg3[%c0_2, %c0_3] : memref<8x40xf32, #tpu.memory_space<vmem>>, vector<8x40xf32>
    %c0_4 = arith.constant 0 : index
    %c0_5 = arith.constant 0 : index
    %4 = vector.load %arg4[%c0_4, %c0_5] : memref<48x32xf32, #tpu.memory_space<vmem>>, vector<48x32xf32>
    %c0_6 = arith.constant 0 : index
    %c0_7 = arith.constant 0 : index
    %5 = vector.load %arg5[%c0_6, %c0_7] : memref<1x32xf32, #tpu.memory_space<vmem>>, vector<1x32xf32>
    %c0_8 = arith.constant 0 : index
    %c0_9 = arith.constant 0 : index
    %6 = vector.load %arg6[%c0_8, %c0_9] : memref<32x32xf32, #tpu.memory_space<vmem>>, vector<32x32xf32>
    %c0_10 = arith.constant 0 : index
    %c0_11 = arith.constant 0 : index
    %7 = vector.load %arg7[%c0_10, %c0_11] : memref<1x32xf32, #tpu.memory_space<vmem>>, vector<1x32xf32>
    %8 = arith.truncf %2 : vector<8x48xf32> to vector<8x48xbf16>
    %9 = arith.truncf %4 : vector<48x32xf32> to vector<48x32xbf16>
    %cst_12 = arith.constant dense<0.000000e+00> : vector<8x32xf32>
    %10 = tpu.matmul %8, %9, %cst_12 {dimension_numbers = #tpu.dot_dimension_numbers<[1], [0], [0], [1], [0, 0, 1, 1], [], []>} : vector<8x48xbf16>, vector<48x32xbf16>, vector<8x32xf32> -> vector<8x32xf32>
    %11 = vector.broadcast %5 : vector<1x32xf32> to vector<8x32xf32>
    %12 = arith.addf %10, %11 : vector<8x32xf32>
    %cst_13 = arith.constant 0.000000e+00 : f32
    %13 = vector.broadcast %cst_13 : f32 to vector<8x32xf32>
    %14 = arith.maximumf %12, %13 : vector<8x32xf32>
    %15 = arith.truncf %14 : vector<8x32xf32> to vector<8x32xbf16>
    %16 = arith.truncf %6 : vector<32x32xf32> to vector<32x32xbf16>
    %cst_14 = arith.constant dense<0.000000e+00> : vector<8x32xf32>
    %17 = tpu.matmul %15, %16, %cst_14 {dimension_numbers = #tpu.dot_dimension_numbers<[1], [0], [0], [1], [0, 0, 1, 1], [], []>} : vector<8x32xbf16>, vector<32x32xbf16>, vector<8x32xf32> -> vector<8x32xf32>
    %18 = vector.broadcast %7 : vector<1x32xf32> to vector<8x32xf32>
    %19 = arith.addf %17, %18 : vector<8x32xf32>
    %20 = arith.mulf %19, %19 : vector<8x32xf32>
    %cst_15 = arith.constant dense<0.000000e+00> : vector<8xf32>
    %21 = vector.multi_reduction <add>, %20, %cst_15 [1] : vector<8x32xf32> to vector<8xf32>
    %22 = vector.shape_cast %21 : vector<8xf32> to vector<8x1xf32>
    %cst_16 = arith.constant 1.000000e-24 : f32
    %23 = vector.broadcast %cst_16 : f32 to vector<8x1xf32>
    %24 = arith.maximumf %22, %23 : vector<8x1xf32>
    %25 = math.rsqrt %24 : vector<8x1xf32>
    %26 = vector.broadcast %25 : vector<8x1xf32> to vector<8x32xf32>
    %27 = arith.mulf %19, %26 : vector<8x32xf32>
    %c0_17 = arith.constant 0 : index
    %c0_18 = arith.constant 0 : index
    %28 = vector.load %arg8[%c0_17, %c0_18] : memref<40x32xf32, #tpu.memory_space<vmem>>, vector<40x32xf32>
    %c0_19 = arith.constant 0 : index
    %c0_20 = arith.constant 0 : index
    %29 = vector.load %arg9[%c0_19, %c0_20] : memref<1x32xf32, #tpu.memory_space<vmem>>, vector<1x32xf32>
    %c0_21 = arith.constant 0 : index
    %c0_22 = arith.constant 0 : index
    %30 = vector.load %arg10[%c0_21, %c0_22] : memref<32x32xf32, #tpu.memory_space<vmem>>, vector<32x32xf32>
    %c0_23 = arith.constant 0 : index
    %c0_24 = arith.constant 0 : index
    %31 = vector.load %arg11[%c0_23, %c0_24] : memref<1x32xf32, #tpu.memory_space<vmem>>, vector<1x32xf32>
    %32 = arith.truncf %3 : vector<8x40xf32> to vector<8x40xbf16>
    %33 = arith.truncf %28 : vector<40x32xf32> to vector<40x32xbf16>
    %cst_25 = arith.constant dense<0.000000e+00> : vector<8x32xf32>
    %34 = tpu.matmul %32, %33, %cst_25 {dimension_numbers = #tpu.dot_dimension_numbers<[1], [0], [0], [1], [0, 0, 1, 1], [], []>} : vector<8x40xbf16>, vector<40x32xbf16>, vector<8x32xf32> -> vector<8x32xf32>
    %35 = vector.broadcast %29 : vector<1x32xf32> to vector<8x32xf32>
    %36 = arith.addf %34, %35 : vector<8x32xf32>
    %cst_26 = arith.constant 0.000000e+00 : f32
    %37 = vector.broadcast %cst_26 : f32 to vector<8x32xf32>
    %38 = arith.maximumf %36, %37 : vector<8x32xf32>
    %39 = arith.truncf %38 : vector<8x32xf32> to vector<8x32xbf16>
    %40 = arith.truncf %30 : vector<32x32xf32> to vector<32x32xbf16>
    %cst_27 = arith.constant dense<0.000000e+00> : vector<8x32xf32>
    %41 = tpu.matmul %39, %40, %cst_27 {dimension_numbers = #tpu.dot_dimension_numbers<[1], [0], [0], [1], [0, 0, 1, 1], [], []>} : vector<8x32xbf16>, vector<32x32xbf16>, vector<8x32xf32> -> vector<8x32xf32>
    %42 = vector.broadcast %31 : vector<1x32xf32> to vector<8x32xf32>
    %43 = arith.addf %41, %42 : vector<8x32xf32>
    %44 = arith.mulf %43, %43 : vector<8x32xf32>
    %cst_28 = arith.constant dense<0.000000e+00> : vector<8xf32>
    %45 = vector.multi_reduction <add>, %44, %cst_28 [1] : vector<8x32xf32> to vector<8xf32>
    %46 = vector.shape_cast %45 : vector<8xf32> to vector<8x1xf32>
    %cst_29 = arith.constant 1.000000e-24 : f32
    %47 = vector.broadcast %cst_29 : f32 to vector<8x1xf32>
    %48 = arith.maximumf %46, %47 : vector<8x1xf32>
    %49 = math.rsqrt %48 : vector<8x1xf32>
    %50 = vector.broadcast %49 : vector<8x1xf32> to vector<8x32xf32>
    %51 = arith.mulf %43, %50 : vector<8x32xf32>
    %c0_30 = arith.constant 0 : index
    %c0_31 = arith.constant 0 : index
    %52 = vector.load %arg20[%c0_30, %c0_31] : memref<48x32xf32, #tpu.memory_space<vmem>>, vector<48x32xf32>
    %c0_32 = arith.constant 0 : index
    %c0_33 = arith.constant 0 : index
    %53 = vector.load %arg21[%c0_32, %c0_33] : memref<1x32xf32, #tpu.memory_space<vmem>>, vector<1x32xf32>
    %54 = arith.truncf %2 : vector<8x48xf32> to vector<8x48xbf16>
    %55 = arith.truncf %52 : vector<48x32xf32> to vector<48x32xbf16>
    %cst_34 = arith.constant dense<0.000000e+00> : vector<8x32xf32>
    %56 = tpu.matmul %54, %55, %cst_34 {dimension_numbers = #tpu.dot_dimension_numbers<[1], [0], [0], [1], [0, 0, 1, 1], [], []>} : vector<8x48xbf16>, vector<48x32xbf16>, vector<8x32xf32> -> vector<8x32xf32>
    %57 = vector.broadcast %53 : vector<1x32xf32> to vector<8x32xf32>
    %58 = arith.addf %56, %57 : vector<8x32xf32>
    %c0_35 = arith.constant 0 : index
    %c0_36 = arith.constant 0 : index
    %59 = vector.load %arg22[%c0_35, %c0_36] : memref<40x32xf32, #tpu.memory_space<vmem>>, vector<40x32xf32>
    %c0_37 = arith.constant 0 : index
    %c0_38 = arith.constant 0 : index
    %60 = vector.load %arg23[%c0_37, %c0_38] : memref<1x32xf32, #tpu.memory_space<vmem>>, vector<1x32xf32>
    %61 = arith.truncf %3 : vector<8x40xf32> to vector<8x40xbf16>
    %62 = arith.truncf %59 : vector<40x32xf32> to vector<40x32xbf16>
    %cst_39 = arith.constant dense<0.000000e+00> : vector<8x32xf32>
    %63 = tpu.matmul %61, %62, %cst_39 {dimension_numbers = #tpu.dot_dimension_numbers<[1], [0], [0], [1], [0, 0, 1, 1], [], []>} : vector<8x40xbf16>, vector<40x32xbf16>, vector<8x32xf32> -> vector<8x32xf32>
    %64 = vector.broadcast %60 : vector<1x32xf32> to vector<8x32xf32>
    %65 = arith.addf %63, %64 : vector<8x32xf32>
    %c0_40 = arith.constant 0 : index
    %c0_41 = arith.constant 0 : index
    %66 = vector.load %arg12[%c0_40, %c0_41] : memref<48x32xf32, #tpu.memory_space<vmem>>, vector<48x32xf32>
    %67 = vector.broadcast %0 : f32 to vector<48x32xf32>
    %68 = arith.mulf %66, %67 : vector<48x32xf32>
    %c0_42 = arith.constant 0 : index
    %c0_43 = arith.constant 0 : index
    %69 = vector.load %arg4[%c0_42, %c0_43] : memref<48x32xf32, #tpu.memory_space<vmem>>, vector<48x32xf32>
    %70 = vector.broadcast %1 : f32 to vector<48x32xf32>
    %71 = arith.mulf %69, %70 : vector<48x32xf32>
    %72 = arith.addf %68, %71 : vector<48x32xf32>
    %c0_44 = arith.constant 0 : index
    %c0_45 = arith.constant 0 : index
    %73 = vector.load %arg13[%c0_44, %c0_45] : memref<1x32xf32, #tpu.memory_space<vmem>>, vector<1x32xf32>
    %74 = vector.broadcast %0 : f32 to vector<1x32xf32>
    %75 = arith.mulf %73, %74 : vector<1x32xf32>
    %c0_46 = arith.constant 0 : index
    %c0_47 = arith.constant 0 : index
    %76 = vector.load %arg5[%c0_46, %c0_47] : memref<1x32xf32, #tpu.memory_space<vmem>>, vector<1x32xf32>
    %77 = vector.broadcast %1 : f32 to vector<1x32xf32>
    %78 = arith.mulf %76, %77 : vector<1x32xf32>
    %79 = arith.addf %75, %78 : vector<1x32xf32>
    %c0_48 = arith.constant 0 : index
    %c0_49 = arith.constant 0 : index
    %80 = vector.load %arg14[%c0_48, %c0_49] : memref<32x32xf32, #tpu.memory_space<vmem>>, vector<32x32xf32>
    %81 = vector.broadcast %0 : f32 to vector<32x32xf32>
    %82 = arith.mulf %80, %81 : vector<32x32xf32>
    %c0_50 = arith.constant 0 : index
    %c0_51 = arith.constant 0 : index
    %83 = vector.load %arg6[%c0_50, %c0_51] : memref<32x32xf32, #tpu.memory_space<vmem>>, vector<32x32xf32>
    %84 = vector.broadcast %1 : f32 to vector<32x32xf32>
    %85 = arith.mulf %83, %84 : vector<32x32xf32>
    %86 = arith.addf %82, %85 : vector<32x32xf32>
    %c0_52 = arith.constant 0 : index
    %c0_53 = arith.constant 0 : index
    %87 = vector.load %arg15[%c0_52, %c0_53] : memref<1x32xf32, #tpu.memory_space<vmem>>, vector<1x32xf32>
    %88 = vector.broadcast %0 : f32 to vector<1x32xf32>
    %89 = arith.mulf %87, %88 : vector<1x32xf32>
    %c0_54 = arith.constant 0 : index
    %c0_55 = arith.constant 0 : index
    %90 = vector.load %arg7[%c0_54, %c0_55] : memref<1x32xf32, #tpu.memory_space<vmem>>, vector<1x32xf32>
    %91 = vector.broadcast %1 : f32 to vector<1x32xf32>
    %92 = arith.mulf %90, %91 : vector<1x32xf32>
    %93 = arith.addf %89, %92 : vector<1x32xf32>
    %c0_56 = arith.constant 0 : index
    %c0_57 = arith.constant 0 : index
    %94 = vector.load %arg16[%c0_56, %c0_57] : memref<40x32xf32, #tpu.memory_space<vmem>>, vector<40x32xf32>
    %95 = vector.broadcast %0 : f32 to vector<40x32xf32>
    %96 = arith.mulf %94, %95 : vector<40x32xf32>
    %c0_58 = arith.constant 0 : index
    %c0_59 = arith.constant 0 : index
    %97 = vector.load %arg8[%c0_58, %c0_59] : memref<40x32xf32, #tpu.memory_space<vmem>>, vector<40x32xf32>
    %98 = vector.broadcast %1 : f32 to vector<40x32xf32>
    %99 = arith.mulf %97, %98 : vector<40x32xf32>
    %100 = arith.addf %96, %99 : vector<40x32xf32>
    %c0_60 = arith.constant 0 : index
    %c0_61 = arith.constant 0 : index
    %101 = vector.load %arg17[%c0_60, %c0_61] : memref<1x32xf32, #tpu.memory_space<vmem>>, vector<1x32xf32>
    %102 = vector.broadcast %0 : f32 to vector<1x32xf32>
    %103 = arith.mulf %101, %102 : vector<1x32xf32>
    %c0_62 = arith.constant 0 : index
    %c0_63 = arith.constant 0 : index
    %104 = vector.load %arg9[%c0_62, %c0_63] : memref<1x32xf32, #tpu.memory_space<vmem>>, vector<1x32xf32>
    %105 = vector.broadcast %1 : f32 to vector<1x32xf32>
    %106 = arith.mulf %104, %105 : vector<1x32xf32>
    %107 = arith.addf %103, %106 : vector<1x32xf32>
    %c0_64 = arith.constant 0 : index
    %c0_65 = arith.constant 0 : index
    %108 = vector.load %arg18[%c0_64, %c0_65] : memref<32x32xf32, #tpu.memory_space<vmem>>, vector<32x32xf32>
    %109 = vector.broadcast %0 : f32 to vector<32x32xf32>
    %110 = arith.mulf %108, %109 : vector<32x32xf32>
    %c0_66 = arith.constant 0 : index
    %c0_67 = arith.constant 0 : index
    %111 = vector.load %arg10[%c0_66, %c0_67] : memref<32x32xf32, #tpu.memory_space<vmem>>, vector<32x32xf32>
    %112 = vector.broadcast %1 : f32 to vector<32x32xf32>
    %113 = arith.mulf %111, %112 : vector<32x32xf32>
    %114 = arith.addf %110, %113 : vector<32x32xf32>
    %c0_68 = arith.constant 0 : index
    %c0_69 = arith.constant 0 : index
    %115 = vector.load %arg19[%c0_68, %c0_69] : memref<1x32xf32, #tpu.memory_space<vmem>>, vector<1x32xf32>
    %116 = vector.broadcast %0 : f32 to vector<1x32xf32>
    %117 = arith.mulf %115, %116 : vector<1x32xf32>
    %c0_70 = arith.constant 0 : index
    %c0_71 = arith.constant 0 : index
    %118 = vector.load %arg11[%c0_70, %c0_71] : memref<1x32xf32, #tpu.memory_space<vmem>>, vector<1x32xf32>
    %119 = vector.broadcast %1 : f32 to vector<1x32xf32>
    %120 = arith.mulf %118, %119 : vector<1x32xf32>
    %121 = arith.addf %117, %120 : vector<1x32xf32>
    %c0_72 = arith.constant 0 : index
    %c0_73 = arith.constant 0 : index
    %122 = vector.load %arg29[%c0_72, %c0_73] : memref<48x32xf32, #tpu.memory_space<vmem>>, vector<48x32xf32>
    tpu.vector_store %arg29[%c0_72, %c0_73], %72 {strides = array<i32>} : memref<48x32xf32, #tpu.memory_space<vmem>>, vector<48x32xf32>,
    %c0_74 = arith.constant 0 : index
    %c0_75 = arith.constant 0 : index
    %123 = vector.load %arg30[%c0_74, %c0_75] : memref<1x32xf32, #tpu.memory_space<vmem>>, vector<1x32xf32>
    tpu.vector_store %arg30[%c0_74, %c0_75], %79 {strides = array<i32>} : memref<1x32xf32, #tpu.memory_space<vmem>>, vector<1x32xf32>,
    %c0_76 = arith.constant 0 : index
    %c0_77 = arith.constant 0 : index
    %124 = vector.load %arg31[%c0_76, %c0_77] : memref<32x32xf32, #tpu.memory_space<vmem>>, vector<32x32xf32>
    tpu.vector_store %arg31[%c0_76, %c0_77], %86 {strides = array<i32>} : memref<32x32xf32, #tpu.memory_space<vmem>>, vector<32x32xf32>,
    %c0_78 = arith.constant 0 : index
    %c0_79 = arith.constant 0 : index
    %125 = vector.load %arg32[%c0_78, %c0_79] : memref<1x32xf32, #tpu.memory_space<vmem>>, vector<1x32xf32>
    tpu.vector_store %arg32[%c0_78, %c0_79], %93 {strides = array<i32>} : memref<1x32xf32, #tpu.memory_space<vmem>>, vector<1x32xf32>,
    %c0_80 = arith.constant 0 : index
    %c0_81 = arith.constant 0 : index
    %126 = vector.load %arg33[%c0_80, %c0_81] : memref<40x32xf32, #tpu.memory_space<vmem>>, vector<40x32xf32>
    tpu.vector_store %arg33[%c0_80, %c0_81], %100 {strides = array<i32>} : memref<40x32xf32, #tpu.memory_space<vmem>>, vector<40x32xf32>,
    %c0_82 = arith.constant 0 : index
    %c0_83 = arith.constant 0 : index
    %127 = vector.load %arg34[%c0_82, %c0_83] : memref<1x32xf32, #tpu.memory_space<vmem>>, vector<1x32xf32>
    tpu.vector_store %arg34[%c0_82, %c0_83], %107 {strides = array<i32>} : memref<1x32xf32, #tpu.memory_space<vmem>>, vector<1x32xf32>,
    %c0_84 = arith.constant 0 : index
    %c0_85 = arith.constant 0 : index
    %128 = vector.load %arg35[%c0_84, %c0_85] : memref<32x32xf32, #tpu.memory_space<vmem>>, vector<32x32xf32>
    tpu.vector_store %arg35[%c0_84, %c0_85], %114 {strides = array<i32>} : memref<32x32xf32, #tpu.memory_space<vmem>>, vector<32x32xf32>,
    %c0_86 = arith.constant 0 : index
    %c0_87 = arith.constant 0 : index
    %129 = vector.load %arg36[%c0_86, %c0_87] : memref<1x32xf32, #tpu.memory_space<vmem>>, vector<1x32xf32>
    tpu.vector_store %arg36[%c0_86, %c0_87], %121 {strides = array<i32>} : memref<1x32xf32, #tpu.memory_space<vmem>>, vector<1x32xf32>,
    %130 = arith.truncf %2 : vector<8x48xf32> to vector<8x48xbf16>
    %131 = arith.truncf %72 : vector<48x32xf32> to vector<48x32xbf16>
    %cst_88 = arith.constant dense<0.000000e+00> : vector<8x32xf32>
    %132 = tpu.matmul %130, %131, %cst_88 {dimension_numbers = #tpu.dot_dimension_numbers<[1], [0], [0], [1], [0, 0, 1, 1], [], []>} : vector<8x48xbf16>, vector<48x32xbf16>, vector<8x32xf32> -> vector<8x32xf32>
    %133 = vector.broadcast %79 : vector<1x32xf32> to vector<8x32xf32>
    %134 = arith.addf %132, %133 : vector<8x32xf32>
    %cst_89 = arith.constant 0.000000e+00 : f32
    %135 = vector.broadcast %cst_89 : f32 to vector<8x32xf32>
    %136 = arith.maximumf %134, %135 : vector<8x32xf32>
    %137 = arith.truncf %136 : vector<8x32xf32> to vector<8x32xbf16>
    %138 = arith.truncf %86 : vector<32x32xf32> to vector<32x32xbf16>
    %cst_90 = arith.constant dense<0.000000e+00> : vector<8x32xf32>
    %139 = tpu.matmul %137, %138, %cst_90 {dimension_numbers = #tpu.dot_dimension_numbers<[1], [0], [0], [1], [0, 0, 1, 1], [], []>} : vector<8x32xbf16>, vector<32x32xbf16>, vector<8x32xf32> -> vector<8x32xf32>
    %140 = vector.broadcast %93 : vector<1x32xf32> to vector<8x32xf32>
    %141 = arith.addf %139, %140 : vector<8x32xf32>
    %142 = arith.mulf %141, %141 : vector<8x32xf32>
    %cst_91 = arith.constant dense<0.000000e+00> : vector<8xf32>
    %143 = vector.multi_reduction <add>, %142, %cst_91 [1] : vector<8x32xf32> to vector<8xf32>
    %144 = vector.shape_cast %143 : vector<8xf32> to vector<8x1xf32>
    %cst_92 = arith.constant 1.000000e-24 : f32
    %145 = vector.broadcast %cst_92 : f32 to vector<8x1xf32>
    %146 = arith.maximumf %144, %145 : vector<8x1xf32>
    %147 = math.rsqrt %146 : vector<8x1xf32>
    %148 = vector.broadcast %147 : vector<8x1xf32> to vector<8x32xf32>
    %149 = arith.mulf %141, %148 : vector<8x32xf32>
    %150 = arith.truncf %3 : vector<8x40xf32> to vector<8x40xbf16>
    %151 = arith.truncf %100 : vector<40x32xf32> to vector<40x32xbf16>
    %cst_93 = arith.constant dense<0.000000e+00> : vector<8x32xf32>
    %152 = tpu.matmul %150, %151, %cst_93 {dimension_numbers = #tpu.dot_dimension_numbers<[1], [0], [0], [1], [0, 0, 1, 1], [], []>} : vector<8x40xbf16>, vector<40x32xbf16>, vector<8x32xf32> -> vector<8x32xf32>
    %153 = vector.broadcast %107 : vector<1x32xf32> to vector<8x32xf32>
    %154 = arith.addf %152, %153 : vector<8x32xf32>
    %cst_94 = arith.constant 0.000000e+00 : f32
    %155 = vector.broadcast %cst_94 : f32 to vector<8x32xf32>
    %156 = arith.maximumf %154, %155 : vector<8x32xf32>
    %157 = arith.truncf %156 : vector<8x32xf32> to vector<8x32xbf16>
    %158 = arith.truncf %114 : vector<32x32xf32> to vector<32x32xbf16>
    %cst_95 = arith.constant dense<0.000000e+00> : vector<8x32xf32>
    %159 = tpu.matmul %157, %158, %cst_95 {dimension_numbers = #tpu.dot_dimension_numbers<[1], [0], [0], [1], [0, 0, 1, 1], [], []>} : vector<8x32xbf16>, vector<32x32xbf16>, vector<8x32xf32> -> vector<8x32xf32>
    %160 = vector.broadcast %121 : vector<1x32xf32> to vector<8x32xf32>
    %161 = arith.addf %159, %160 : vector<8x32xf32>
    %162 = arith.mulf %161, %161 : vector<8x32xf32>
    %cst_96 = arith.constant dense<0.000000e+00> : vector<8xf32>
    %163 = vector.multi_reduction <add>, %162, %cst_96 [1] : vector<8x32xf32> to vector<8xf32>
    %164 = vector.shape_cast %163 : vector<8xf32> to vector<8x1xf32>
    %cst_97 = arith.constant 1.000000e-24 : f32
    %165 = vector.broadcast %cst_97 : f32 to vector<8x1xf32>
    %166 = arith.maximumf %164, %165 : vector<8x1xf32>
    %167 = math.rsqrt %166 : vector<8x1xf32>
    %168 = vector.broadcast %167 : vector<8x1xf32> to vector<8x32xf32>
    %169 = arith.mulf %161, %168 : vector<8x32xf32>
    %cst_98 = arith.constant 0.000000e+00 : f32
    %170 = vector.broadcast %cst_98 : f32 to vector<8x64xf32>
    %171 = tpu.concatenate %58, %65, %27, %51, %149, %169, %170 in 1 : vector<8x32xf32>, vector<8x32xf32>, vector<8x32xf32>, vector<8x32xf32>, vector<8x32xf32>, vector<8x32xf32>, vector<8x64xf32> -> vector<8x256xf32>
    %c0_99 = arith.constant 0 : index
    %c0_100 = arith.constant 0 : index
    %172 = vector.load %arg26[%c0_99, %c0_100] : memref<8x256xf32, #tpu.memory_space<vmem>>, vector<8x256xf32>
    tpu.vector_store %arg26[%c0_99, %c0_100], %171 {strides = array<i32>} : memref<8x256xf32, #tpu.memory_space<vmem>>, vector<8x256xf32>,
    %c0_101 = arith.constant 0 : index
    %c0_102 = arith.constant 0 : index
    %173 = vector.load %arg25[%c0_101, %c0_102] : memref<64x32xf32, #tpu.memory_space<vmem>>, vector<64x32xf32>
    %174 = arith.mulf %27, %169 : vector<8x32xf32>
    %cst_103 = arith.constant dense<0.000000e+00> : vector<8xf32>
    %175 = vector.multi_reduction <add>, %174, %cst_103 [1] : vector<8x32xf32> to vector<8xf32>
    %176 = vector.shape_cast %175 : vector<8xf32> to vector<8x1xf32>
    %177 = arith.truncf %27 : vector<8x32xf32> to vector<8x32xbf16>
    %178 = arith.truncf %173 : vector<64x32xf32> to vector<64x32xbf16>
    %179 = tpu.transpose %178, [1, 0] : vector<64x32xbf16> -> vector<32x64xbf16>
    %cst_104 = arith.constant dense<0.000000e+00> : vector<8x64xf32>
    %180 = tpu.matmul %177, %179, %cst_104 {dimension_numbers = #tpu.dot_dimension_numbers<[1], [0], [0], [1], [0, 0, 1, 1], [], []>} : vector<8x32xbf16>, vector<32x64xbf16>, vector<8x64xf32> -> vector<8x64xf32>
    %cst_105 = arith.constant 0.000000e+00 : f32
    %181 = vector.broadcast %cst_105 : f32 to vector<8x63xf32>
    %182 = tpu.concatenate %176, %180, %181 in 1 : vector<8x1xf32>, vector<8x64xf32>, vector<8x63xf32> -> vector<8x128xf32>
    %c0_106 = arith.constant 0 : index
    %c0_107 = arith.constant 0 : index
    %183 = vector.load %arg27[%c0_106, %c0_107] : memref<8x128xf32, #tpu.memory_space<vmem>>, vector<8x128xf32>
    tpu.vector_store %arg27[%c0_106, %c0_107], %182 {strides = array<i32>} : memref<8x128xf32, #tpu.memory_space<vmem>>, vector<8x128xf32>,
    %c0_108 = arith.constant 0 : index
    %c0_109 = arith.constant 0 : index
    %184 = vector.load %arg24[%c0_108, %c0_109] : memref<64x32xf32, #tpu.memory_space<vmem>>, vector<64x32xf32>
    %185 = arith.mulf %51, %149 : vector<8x32xf32>
    %cst_110 = arith.constant dense<0.000000e+00> : vector<8xf32>
    %186 = vector.multi_reduction <add>, %185, %cst_110 [1] : vector<8x32xf32> to vector<8xf32>
    %187 = vector.shape_cast %186 : vector<8xf32> to vector<8x1xf32>
    %188 = arith.truncf %51 : vector<8x32xf32> to vector<8x32xbf16>
    %189 = arith.truncf %184 : vector<64x32xf32> to vector<64x32xbf16>
    %190 = tpu.transpose %189, [1, 0] : vector<64x32xbf16> -> vector<32x64xbf16>
    %cst_111 = arith.constant dense<0.000000e+00> : vector<8x64xf32>
    %191 = tpu.matmul %188, %190, %cst_111 {dimension_numbers = #tpu.dot_dimension_numbers<[1], [0], [0], [1], [0, 0, 1, 1], [], []>} : vector<8x32xbf16>, vector<32x64xbf16>, vector<8x64xf32> -> vector<8x64xf32>
    %cst_112 = arith.constant 0.000000e+00 : f32
    %192 = vector.broadcast %cst_112 : f32 to vector<8x63xf32>
    %193 = tpu.concatenate %187, %191, %192 in 1 : vector<8x1xf32>, vector<8x64xf32>, vector<8x63xf32> -> vector<8x128xf32>
    %c0_113 = arith.constant 0 : index
    %c0_114 = arith.constant 0 : index
    %194 = vector.load %arg28[%c0_113, %c0_114] : memref<8x128xf32, #tpu.memory_space<vmem>>, vector<8x128xf32>
    tpu.vector_store %arg28[%c0_113, %c0_114], %193 {strides = array<i32>} : memref<8x128xf32, #tpu.memory_space<vmem>>, vector<8x128xf32>,
    %c0_115 = arith.constant 0 : index
    %195 = memref.load %arg1[%c0_115] : memref<1xi32, #tpu.memory_space<smem>>
    %c56_i32 = arith.constant 56 : i32
    %196 = arith.minsi %195, %c56_i32 : i32
    %197 = tpu.assume_multiple %196, 8 : i32
    %c0_116 = arith.constant 0 : index
    %c0_117 = arith.constant 0 : index
    %198 = vector.load %arg24[%c0_116, %c0_117] : memref<64x32xf32, #tpu.memory_space<vmem>>, vector<64x32xf32>
    %c0_118 = arith.constant 0 : index
    %c0_119 = arith.constant 0 : index
    %199 = vector.load %arg37[%c0_118, %c0_119] : memref<64x32xf32, #tpu.memory_space<vmem>>, vector<64x32xf32>
    tpu.vector_store %arg37[%c0_118, %c0_119], %198 {strides = array<i32>} : memref<64x32xf32, #tpu.memory_space<vmem>>, vector<64x32xf32>,
    %c0_120 = arith.constant 0 : index
    %c0_121 = arith.constant 0 : index
    %200 = vector.load %arg25[%c0_120, %c0_121] : memref<64x32xf32, #tpu.memory_space<vmem>>, vector<64x32xf32>
    %c0_122 = arith.constant 0 : index
    %c0_123 = arith.constant 0 : index
    %201 = vector.load %arg38[%c0_122, %c0_123] : memref<64x32xf32, #tpu.memory_space<vmem>>, vector<64x32xf32>
    tpu.vector_store %arg38[%c0_122, %c0_123], %200 {strides = array<i32>} : memref<64x32xf32, #tpu.memory_space<vmem>>, vector<64x32xf32>,
    %202 = arith.index_cast %197 : i32 to index
    %c0_124 = arith.constant 0 : index
    %203 = vector.load %arg37[%202, %c0_124] : memref<64x32xf32, #tpu.memory_space<vmem>>, vector<8x32xf32>
    tpu.vector_store %arg37[%202, %c0_124], %149 {strides = array<i32>} : memref<64x32xf32, #tpu.memory_space<vmem>>, vector<8x32xf32>,
    %204 = arith.index_cast %197 : i32 to index
    %c0_125 = arith.constant 0 : index
    %205 = vector.load %arg38[%204, %c0_125] : memref<64x32xf32, #tpu.memory_space<vmem>>, vector<8x32xf32>
    tpu.vector_store %arg38[%204, %c0_125], %169 {strides = array<i32>} : memref<64x32xf32, #tpu.memory_space<vmem>>, vector<8x32xf32>,
    return
  }
}

</mosaic_0001>

<bundles_post_ra>
// kernel: moco_head_forward_train.1
= control target key start
LH: loop header
LB: loop body
LE: loop exit
PB: predicated region body
PF: predicated region fallthrough
CT: control target
= control target key end

     0   :  { %s1609_s6 = smov 1   ;;  %s1610_s10 = smov 2   ;;  %s2368_s0 = inlined_call_operand.smem [shape: u32[39], index: -1, kind: input, shape index: {}] }
   0x1   :  { %s1669_s5 = sld [smem:[%s2368_s0]]   ;;  %s1611_s14 = smov 3  }
   0x2   :  { %s1674_s9 = sld [smem:[%s2368_s0 + %s1609_s6]]   ;;  %s1612_s18 = smov 4  }
   0x3   :  { %s1679_s13 = sld [smem:[%s2368_s0 + %s1610_s10]]   ;;  %s1613_s22 = smov 5  }
   0x4   :  { %s1684_s17 = sld [smem:[%s2368_s0 + %s1611_s14]]   ;;  %s1614_s26 = smov 6  }
   0x5   :  { %s1689_s21 = sld [smem:[%s2368_s0 + %s1612_s18]]   ;;  %s1615_s30 = smov 7  }
   0x6   :  { %s1694_s25 = sld [smem:[%s2368_s0 + %s1613_s22]]   ;;  %s1616_s4 = smov 8  }
   0x7   :  { %s1699_s29 = sld [smem:[%s2368_s0 + %s1614_s26]]   ;;  %s1617_s10 = smov 9  }
   0x8   :  { %2381 = sst [smem:[#allocation18_spill]] %s1674_s9  ;;  %s1618_s15 = smov 10  }
   0x9   :  { %s1704_s3 = sld [smem:[%s2368_s0 + %s1615_s30]]   ;;  %s1619_s20 = smov 11  }
   0xa   :  { %s1709_s8 = sld [smem:[%s2368_s0 + %s1616_s4]]   ;;  %s1620_s26 = smov 12  }
   0xb   :  { %s1714_s14 = sld [smem:[%s2368_s0 + %s1617_s10]]   ;;  %s1621_s1 = smov 13  }
   0xc   :  { %s1719_s19 = sld [smem:[%s2368_s0 + %s1618_s15]]   ;;  %s1622_s7 = smov 14  }
   0xd   :  { %s1724_s24 = sld [smem:[%s2368_s0 + %s1619_s20]]   ;;  %s1623_s15 = smov 15  }
   0xe   :  { %s1729_s30 = sld [smem:[%s2368_s0 + %s1620_s26]]   ;;  %s1624_s22 = smov 16  }
   0xf   :  { %s1734_s6 = sld [smem:[%s2368_s0 + %s1621_s1]]   ;;  %s1625_s28 = smov 17  }
  0x10   :  { %s1739_s12 = sld [smem:[%s2368_s0 + %s1622_s7]]   ;;  %s1626_s7 = smov 18  }
  0x11   :  { %s1744_s20 = sld [smem:[%s2368_s0 + %s1623_s15]]   ;;  %s1627_s15 = smov 19  }
  0x12   :  { %s1749_s27 = sld [smem:[%s2368_s0 + %s1624_s22]]   ;;  %s1628_s22 = smov 20  }
  0x13   :  { %2382 = sst [smem:[#allocation19_spill]] %s1724_s24 }
  0x14   :  { %s1754_s4 = sld [smem:[%s2368_s0 + %s1625_s28]]   ;;  %s1629_s28 = smov 21  }
  0x15   :  { %2383 = sst [smem:[#allocation20_spill]] %s1734_s6 }
  0x16   :  { %s1759_s9 = sld [smem:[%s2368_s0 + %s1626_s7]]   ;;  %s1630_s7 = smov 22  }
  0x17   :  { %2384 = sst [smem:[#allocation21_spill]] %s1744_s20 }
  0x18   :  { %2385 = sst [smem:[#allocation22_spill]] %s1749_s27 }
  0x19   :  { %s1764_s20 = sld [smem:[%s2368_s0 + %s1627_s15]]   ;;  %s1631_s15 = smov 23  }
  0x1a   :  { %2386 = sst [smem:[#allocation23_spill]] %s1754_s4 }
  0x1b   :  { %s1769_s6 = sld [smem:[%s2368_s0 + %s1628_s22]]   ;;  %s1632_s22 = smov 24  }
  0x1c   :  { %2387 = sst [smem:[#allocation24_spill]] %s1759_s9 }
  0x1d   :  { %s1774_s4 = sld [smem:[%s2368_s0 + %s1629_s28]]   ;;  %s1633_s28 = smov 25  }
  0x1e   :  { %s1779_s9 = sld [smem:[%s2368_s0 + %s1630_s7]]   ;;  %s1634_s7 = smov 26  }
  0x1f   :  { %2388 = sst [smem:[#allocation25_spill]] %s1764_s20 }
  0x20   :  { %s1784_s20 = sld [smem:[%s2368_s0 + %s1631_s15]]   ;;  %s1635_s15 = smov 27  }
  0x21   :  { %2389 = sst [smem:[#allocation26_spill]] %s1769_s6 }
  0x22   :  { %s1789_s24 = sld [smem:[%s2368_s0 + %s1632_s22]]   ;;  %s1636_s22 = smov 28  }
  0x23   :  { %2390 = sst [smem:[#allocation27_spill]] %s1774_s4 }
  0x24   :  { %s1794_s4 = sld [smem:[%s2368_s0 + %s1633_s28]]   ;;  %s1637_s28 = smov 29  }
  0x25   :  { %s1799_s27 = sld [smem:[%s2368_s0 + %s1634_s7]]   ;;  %s1638_s7 = smov 30  }
  0x26   :  { %2391 = sst [smem:[#allocation28_spill]] %s1784_s20 }
  0x27   :  { %s1804_s20 = sld [smem:[%s2368_s0 + %s1635_s15]]   ;;  %s1639_s15 = smov 31  }
  0x28   :  { %2392 = sst [smem:[#allocation29_spill]] %s1789_s24 }
  0x29   :  { %s1809_s24 = sld [smem:[%s2368_s0 + %s1636_s22]]   ;;  %s1640_s22 = smov 32  }
  0x2a   :  { %2393 = sst [smem:[#allocation30_spill]] %s1794_s4 }
  0x2b   :  { %2394 = sst [smem:[#allocation31_spill]] %s1799_s27 }
  0x2c   :  { %s1814_s4 = sld [smem:[%s2368_s0 + %s1637_s28]]   ;;  %s1641_s28 = smov 33  }
  0x2d   :  { %2395 = sst [smem:[#allocation32_spill]] %s1804_s20 }
  0x2e   :  { %s1819_s27 = sld [smem:[%s2368_s0 + %s1638_s7]]   ;;  %s1642_s7 = smov 34  }
  0x2f   :  { %2396 = sst [smem:[#allocation33_spill]] %s1809_s24 }
  0x30   :  { %s1824_s20 = sld [smem:[%s2368_s0 + %s1639_s15]]   ;;  %s1643_s15 = smov 35  }
  0x31   :  { %s1829_s24 = sld [smem:[%s2368_s0 + %s1640_s22]]   ;;  %s1644_s22 = smov 36  }
  0x32   :  { %s1834_s6 = sld [smem:[%s2368_s0 + %s1641_s28]]   ;;  %s1645_s28 = smov 37  }
  0x34   :  { %2397 = sst [smem:[#allocation34_spill]] %s1819_s27 }
  0x35   :  { %s1839_s27 = sld [smem:[%s2368_s0 + %s1642_s7]]   ;;  %s1646_s7 = smov 38  }
  0x36   :  { %2398 = sst [smem:[#allocation35_spill]] %s1824_s20 }
  0x37   :  { %2399 = sst [smem:[#allocation36_spill]] %s1829_s24 }
  0x38   :  { %2400 = sst [smem:[#allocation37_spill]] %s1834_s6 }
  0x39   :  { %s1844_s20 = sld [smem:[%s2368_s0 + %s1643_s15]]  }
  0x3a   :  { %s1849_s24 = sld [smem:[%s2368_s0 + %s1644_s22]]  }
  0x3b   :  { %2401 = sst [smem:[#allocation38_spill]] %s1839_s27 }
  0x3c   :  { %s1854_s6 = sld [smem:[%s2368_s0 + %s1645_s28]]  }
  0x3d   :  { %s1859_s27 = sld [smem:[%s2368_s0 + %s1646_s7]]  }
  0x3e   :  { %85 = vsyncpa [#allocation5], 0 }
  0x3f   :  { %86 = vsyncpa [#allocation7], 0 }
  0x40   :  { %87 = vsyncpa [#allocation10], 0  ;;  %s143_s15 = ssub.f32 1.0, %s1669_s5  ;;  %v146_v0 = vld [vmem:[%s1689_s21] sm:$0xff]  ;;  %v147_v1 = vld [vmem:[%s1689_s21 + $0x8] sm:$0xff]  ;;  %v1866_v3 = vstv %s1669_s5  ;;  %v1647_v4 = vmov 0.0  }
  0x41   :  { %v516_v2 = vld [vmem:[%s1729_s30] sm:$0xff]  ;;  %1293 = vmatprep.subr.bf16.mxu0 %v1647_v4  ;;  %v159_v5 = vpack.c.bf16 %v147_v1, %v146_v0  ;;  %v517_v6 = vld [vmem:[%s1729_s30 + $0x8] sm:$0xff]  ;;  %v148_v8 = vld [vmem:[%s1689_s21 + $0x10] sm:$0xff]  ;;  %1303 = vmatprep.subr.bf16.mxu1 %v1647_v4  ;;  %vm1648_vm0 = vmmov 0   ;;  %vm222_vm1 = vcmask 261120  }
  0x42   :  { %v523_v7 = vmul.f32 %v1866_v3, %v516_v2  ;;  %v149_v9 = vld [vmem:[%s1689_s21 + $0x18] sm:$0xff]  ;;  %v524_v10 = vmul.f32 %v1866_v3, %v517_v6  ;;  %v1875_v11 = vstv %s143_s15  ;;  %v518_v13 = vld [vmem:[%s1729_s30 + $0x10] sm:$0xff]  ;;  %v150_v15 = vld [vmem:[%s1689_s21 + $0x20] sm:$0xff]  ;;  %1299 = vmatprep.mubr.msk.bf16.mxu0 %vm1648_vm0, %v1647_v4  ;;  %1307 = vmatprep.mubr.msk.bf16.mxu1 %vm1648_vm0, %v1647_v4 }
  0x43   :  { %v160_v12 = vpack.c.bf16 %v149_v9, %v148_v8  ;;  %v519_v14 = vld [vmem:[%s1729_s30 + $0x18] sm:$0xff]  ;;  %1294 = vmatpush3.bf16.msra.mxu0 %v159_v5  ;;  %v530_v16 = vmul.f32 %v1875_v11, %v146_v0  ;;  %v531_v17 = vmul.f32 %v1875_v11, %v147_v1  ;;  %v525_v18 = vmul.f32 %v1866_v3, %v518_v13  ;;  %v151_v20 = vld [vmem:[%s1689_s21 + $0x28] sm:$0xff]  ;;  %v520_v21 = vld [vmem:[%s1729_s30 + $0x20] sm:$0xff] }
  0x44   :  { %v526_v19 = vmul.f32 %v1866_v3, %v519_v14  ;;  %v521_v22 = vld [vmem:[%s1729_s30 + $0x28] sm:$0xff]  ;;  %1295 = vmatprep.subr.bf16.mxu0 %v1647_v4  ;;  %v532_v23 = vmul.f32 %v1875_v11, %v148_v8  ;;  %v533_v24 = vmul.f32 %v1875_v11, %v149_v9  ;;  %v527_v25 = vmul.f32 %v1866_v3, %v520_v21  ;;  %v153_v26 = vld [vmem:[%s1699_s29] sm:$0xff] }
  0x45   :  { %v154_v27 = vld [vmem:[%s1699_s29 + $0x8] sm:$0xff]  ;;  %v1897_v28 = vadd.f32 %v530_v16, %v523_v7  ;;  %v1899_v29 = vadd.f32 %v531_v17, %v524_v10  ;;  %v528_v30 = vmul.f32 %v1866_v3, %v521_v22  ;;  %v534_v31 = vmul.f32 %v1875_v11, %v150_v15  ;;  %v546_v32 = vld [vmem:[%s1739_s12] sm:$0xff] }
  0x46   :  { %v547_v33 = vld [vmem:[%s1739_s12 + $0x8] sm:$0xff]  ;;  %v1905_v34 = vadd.f32 %v532_v23, %v525_v18  ;;  %v1907_v35 = vadd.f32 %v533_v24, %v526_v19  ;;  %v161_v36 = vpack.c.bf16 %v151_v20, %v150_v15  ;;  %v535_v37 = vmul.f32 %v1875_v11, %v151_v20 }
  0x47   :  { %88 = vsyncpa [#allocation13], 0  ;;  %610 = vst.msk [vmem:[%s1814_s4] sm:$0xff] %vm222_vm1, %v1897_v28  ;;  %1296 = vmatpush3.bf16.msra.mxu0 %v160_v12  ;;  %v1916_v38 = vadd.f32 %v534_v31, %v527_v25  ;;  %v144_v39 = vld [vmem:[%s1679_s13] sm:$0xff]  ;;  %v214_v40 = vpack.c.bf16 %v154_v27, %v153_v26  ;;  %v550_v41 = vmul.f32 %v546_v32, %v1866_v3  ;;  %vm168_vm2 = vcmask 392192   ;;  %v155_v49 = vld [vmem:[%s1699_s29 + $0x10] sm:$0xff] }
  0x48   :  { %611 = vst.msk [vmem:[%s1814_s4 + $0x8] sm:$0xff] %vm222_vm1, %v1899_v29  ;;  %v551_v42 = vmul.f32 %v547_v33, %v1866_v3  ;;  %612 = vst.msk [vmem:[%s1814_s4 + $0x10] sm:$0xff] %vm222_vm1, %v1905_v34  ;;  %1297 = vmatprep.subr.bf16.mxu0 %v1647_v4  ;;  %v1928_v43 = vadd.f32 %v535_v37, %v528_v30  ;;  %v554_v44 = vmul.f32 %v1875_v11, %v153_v26  ;;  %v156_v50 = vld [vmem:[%s1699_s29 + $0x18] sm:$0xff]  ;;  %v548_v52 = vld [vmem:[%s1739_s12 + $0x10] sm:$0xff]  ;;  %v163_v60 = vlaneseq  ;;  %s2402_s0 = sld [smem:[#allocation26_spill]]  ;;  %s2403_s5 = sld [smem:[#allocation22_spill]] }
  0x49   :  { %613 = vst.msk [vmem:[%s1814_s4 + $0x18] sm:$0xff] %vm222_vm1, %v1907_v35  ;;  %v555_v45 = vmul.f32 %v1875_v11, %v154_v27  ;;  %614 = vst.msk [vmem:[%s1814_s4 + $0x20] sm:$0xff] %vm222_vm1, %v1916_v38  ;;  %1304 = vmatpush3.bf16.msra.mxu1 %v214_v40  ;;  %v1938_v46 = vpack.c.bf16 %v144_v39, %v144_v39  ;;  %v215_v51 = vpack.c.bf16 %v156_v50, %v155_v49  ;;  %v549_v53 = vld [vmem:[%s1739_s12 + $0x18] sm:$0xff]  ;;  %v1974_v63 = vld [vmem:[%s1694_s25] sm:$0x1]  ;;  %vm298_vm3 = vcmask 1043456  }
  0x4a   :  { %615 = vst.msk [vmem:[%s1814_s4 + $0x28] sm:$0xff] %vm222_vm1, %v1928_v43  ;;  %v1940_v47 = vadd.f32 %v554_v44, %v550_v41  ;;  %1305 = vmatprep.subr.bf16.mxu1 %v1647_v4  ;;  %v556_v54 = vmul.f32 %v1875_v11, %v155_v49  ;;  %v557_v55 = vmul.f32 %v1875_v11, %v156_v50  ;;  %v164_v61 = vshrl.u32 %v163_v60, 7  ;;  %v1979_v6 = vld [vmem:[%s1709_s8] sm:$0xff]  ;;  %v1982_v7 = vld [vmem:[%s1709_s8 + $0x8] sm:$0xff]  ;;  %v1987_v14 = vld [vmem:[%s1709_s8 + $0x10] sm:$0xff]  ;;  %s2405_s13 = sld [smem:[#allocation29_spill]] }
  0x4b   :  { %v1942_v48 = vadd.f32 %v555_v45, %v551_v42  ;;  %1298 = vmatpush3.bf16.msra.mxu0 %v161_v36  ;;  %v552_v56 = vmul.f32 %v548_v52, %v1866_v3  ;;  %v553_v57 = vmul.f32 %v549_v53, %v1866_v3  ;;  %v285_v12 = vpack.c.bf16 %v1982_v7, %v1979_v6  ;;  %v1990_v15 = vld [vmem:[%s1709_s8 + $0x18] sm:$0xff]  ;;  %v1993_v16 = vld [vmem:[%s1709_s8 + $0x20] sm:$0xff]  ;;  %v2017_v23 = vld [vmem:[%s1719_s19 + $0x8] sm:$0xff]  ;;  %s2407_s21 = sld [smem:[#allocation20_spill]]  ;;  %s1649_s29 = smov 32  }
  0x4c   :  { %618 = vst.msk [vmem:[#allocation6] sm:$0xff] %vm222_vm1, %v1940_v47  ;;  %1321 = vmatprep.subr.bf16.mxu0 %v1647_v4  ;;  %v1971_v62 = vsub.s32 0, %v164_v61  ;;  %v286_v17 = vpack.c.bf16 %v1990_v15, %v1987_v14  ;;  %v287_v18 = vpack.c.bf16 %v1993_v16, %v1993_v16  ;;  %v145_v19 = vld [vmem:[%s1684_s17] sm:$0xff]  ;;  %vm294_vm4 = vcmask 326656   ;;  %v2023_v25 = vld [vmem:[%s1719_s19 + $0x10] sm:$0xff]  ;;  %v2026_v26 = vld [vmem:[%s1719_s19 + $0x18] sm:$0xff] }
  0x4d   :  { %619 = vst.msk [vmem:[#allocation6 + $0x8] sm:$0xff] %vm222_vm1, %v1942_v48  ;;  %1306 = vmatpush3.bf16.msra.mxu1 %v215_v51  ;;  %v1963_v58 = vadd.f32 %v556_v54, %v552_v56  ;;  %v1965_v59 = vadd.f32 %v557_v55, %v553_v57  ;;  %v2006_v21 = vpack.c.bf16 %v145_v19, %v145_v19  ;;  %v2014_v22 = vld [vmem:[%s1719_s19] sm:$0xff]  ;;  %v459_v31 = vld [vmem:[%s1779_s9 + $0x8] sm:$0xff]  ;;  %v460_v33 = vld [vmem:[%s1779_s9 + $0x10] sm:$0xff]  ;;  %s2406_s17 = sld [smem:[#allocation19_spill]]  ;;  %s2408_s25 = sld [smem:[#allocation28_spill]] }
  0x4e   :  { %1300 = vmatmul.mubr.msk.bf16.vlgmr.msra.gmra.mrb[0].mxu0 %vm168_vm2, %v1938_v46  ;;  %1311 = vmatprep.subr.bf16.mxu1 %v1647_v4  ;;  %v166_v0 = vrot.slane %v1974_v63, %v1971_v62  ;;  %v300_v20 = vsel %vm298_vm3, %v287_v18, 0  ;;  %v344_v24 = vpack.c.bf16 %v2017_v23, %v2014_v22  ;;  %v345_v27 = vpack.c.bf16 %v2026_v26, %v2023_v25  ;;  %v458_v30 = vld [vmem:[%s1779_s9] sm:$0xff]  ;;  %v461_v36 = vld [vmem:[%s1779_s9 + $0x18] sm:$0xff]  ;;  %v407_v19 = vld [vmem:[%s2402_s0 + $0x28] sm:$0xff]  ;;  %s2410_s8 = sld [smem:[#allocation30_spill]]  ;;  %s2412_s19 = sld [smem:[#allocation23_spill]] }
  0x4f   :  { %1325 = vmatprep.mubr.msk.bf16.mxu0 %vm1648_vm0, %v1647_v4  ;;  %620 = vst.msk [vmem:[#allocation6 + $0x10] sm:$0xff] %vm222_vm1, %v1963_v58  ;;  %621 = vst.msk [vmem:[#allocation6 + $0x18] sm:$0xff] %vm222_vm1, %v1965_v59  ;;  %v464_v32 = vpack.c.bf16 %v459_v31, %v458_v30  ;;  %v462_v37 = vld [vmem:[%s1779_s9 + $0x20] sm:$0xff]  ;;  %v465_v39 = vpack.c.bf16 %v461_v36, %v460_v33  ;;  %s2404_s9 = sld [smem:[#allocation37_spill]]  ;;  %s2413_s30 = sld [smem:[#allocation18_spill]]  ;;  %vm616_vm5 = vcmask 253952  }
  0x50   :  { %1322 = vmatpush3.bf16.msra.mxu0 %v344_v24  ;;  %v466_v40 = vpack.c.bf16 %v462_v37, %v462_v37  ;;  %v2045_v42 = vld [vmem:[%s1704_s3] sm:$0x1]  ;;  %v634_v24 = vpack.c.bf16 %v1899_v29, %v1897_v28  ;;  %v636_v28 = vpack.c.bf16 %v1928_v43, %v1916_v38  ;;  %v685_v29 = vpack.c.bf16 %v1942_v48, %v1940_v47  ;;  %v567_v43 = vld [vmem:[%s2403_s5 + $0x8] sm:$0xff]  ;;  %s2409_s3 = sld [smem:[#allocation24_spill]]  ;;  %s2414_s12 = sld [smem:[#allocation25_spill]] }
  0x51   :  { %1323 = vmatprep.subr.bf16.mxu0 %v1647_v4  ;;  %v220_v44 = vrot.slane %v2045_v42, %v1971_v62  ;;  %v2055_v55 = vld [vmem:[%s1714_s14] sm:$0x1]  ;;  %v572_v48 = vmul.f32 %v567_v43, %v1866_v3  ;;  %s2411_s14 = sld [smem:[#allocation21_spill]]  ;;  %s1651_s16 = smov 1  }
  0x52   :  { %v474_v41 = vsel %vm298_vm3, %v466_v40, 0  ;;  %v292_v56 = vrot.slane %v2055_v55, %v1971_v62  ;;  %v406_v18 = vld [vmem:[%s2402_s0 + $0x20] sm:$0xff]  ;;  %s1652_s22 = smov 96   ;;  %s1653_s23 = smov [#allocation6]  }
  0x53   :  { %v566_v38 = vld [vmem:[%s2403_s5] sm:$0xff]  ;;  %s1102_s26 = sshll.u32 %s1653_s23, 4  ;;  %s1654_s28 = smov [#allocation9]   ;;  %s1103_s26 = int_to_ptr.vmem [resolvable:$true] %s1102_s26 }
  0x54   :  { %1324 = vmatpush3.bf16.msra.mxu0 %v345_v27  ;;  %v635_v27 = vpack.c.bf16 %v1907_v35, %v1905_v34  ;;  %v576_v34 = vmul.f32 %v1875_v11, %v1979_v6  ;;  %v577_v35 = vmul.f32 %v1875_v11, %v1982_v7  ;;  %v571_v47 = vmul.f32 %v566_v38, %v1866_v3  ;;  %v1239_v38 = vld [vmem:[%s2408_s25] ss:$0 sm:$0xff]  ;;  %s1127_s1 = sshll.u32 %s1654_s28, 4  ;;  %p1474_p2 = scmp.lt.s32.totalorder %s1103_s26, %s1103_s26  ;;  %s2319_s1 = int_to_ptr.vmem [resolvable:$true] %s1127_s1 }
  0x55   :  { %1329 = vmatprep.subr.bf16.mxu0 %v1647_v4  ;;  %v578_v6 = vmul.f32 %v1875_v11, %v1987_v14  ;;  %v579_v7 = vmul.f32 %v1875_v11, %v1990_v15  ;;  %v580_v15 = vmul.f32 %v1875_v11, %v1993_v16  ;;  %p1041_p0 = scmp.lt.s32.totalorder %s2413_s30, 56 }
  0x56   :  { %v2101_v30 = vadd.f32 %v576_v34, %v571_v47  ;;  %v2103_v31 = vadd.f32 %v577_v35, %v572_v48  ;;  %v966_v34 = vld [vmem:[%s2405_s13 + $0x28] sm:$0xff] }
  0x57   :  { %1056 = vst.msk [vmem:[%s1854_s6 + $0x28] sm:$0xff] %vm222_vm1, %v966_v34  ;;  %s2424_s30 = smov (!%p1041_p0, %s2413_s30), 56 }
  0x58   :  { %623 = vst.msk [vmem:[%s2404_s9] sm:$0xff] %vm222_vm1, %v2101_v30  ;;  %624 = vst.msk [vmem:[%s2404_s9 + $0x8] sm:$0xff] %vm222_vm1, %v2103_v31  ;;  %s1075_s4 = scalar_lea.vmem %s1854_s6, %s2424_s30  ;;  %s1077_s18 = scalar_lea.vmem %s1859_s27, %s2424_s30 }
 0x121   :  { %v206_v1 = vpop.f32.mrb[0].mxu0 }
 0x122   :  { %v207_v2 = vadd.f32 %v206_v1, %v166_v0  ;;  %v1301_v5 = vpop.f32.mrb[1].mxu0  ;;  %v402_v0 = vld [vmem:[%s2402_s0] sm:$0xff]  ;;  %v403_v1 = vld [vmem:[%s2402_s0 + $0x8] sm:$0xff] }
 0x123   :  { %v209_v8 = vpop.f32.mrb[2].mxu0 }
 0x124   :  { %v212_v9 = vmax.f32 %v207_v2, 0.0  ;;  %v1302_v10 = vpop.f32.mrb[3].mxu0 }
 0x126   :  { %v213_v13 = vpack.c.bf16 %v212_v9, %v212_v9  ;;  %v409_v9 = vpack.c.bf16 %v403_v1, %v402_v0 }
 0x128   :  { %1308 = vmatmul.mubr.msk.bf16.vlgmr.msra.gmra.mrb[0].mxu1 %vm222_vm1, %v213_v13  ;;  %v405_v13 = vld [vmem:[%s2402_s0 + $0x18] sm:$0xff] }
 0x129   :  { %1312 = vmatpush3.bf16.msra.mxu1 %v285_v12  ;;  %1317 = vmatprep.mubr.msk.bf16.mxu1 %vm1648_vm0, %v1647_v4  ;;  %v404_v12 = vld [vmem:[%s2402_s0 + $0x10] sm:$0xff] }
 0x12a   :  { %1313 = vmatprep.subr.bf16.mxu1 %v1647_v4 }
 0x12d   :  { %1314 = vmatpush3.bf16.msra.mxu1 %v286_v17  ;;  %v410_v17 = vpack.c.bf16 %v405_v13, %v404_v12  ;;  %v542_v13 = vld [vmem:[%s2407_s21] sm:$0x1] }
 0x12e   :  { %1315 = vmatprep.subr.bf16.mxu1 %v1647_v4 }
 0x131   :  { %1316 = vmatpush3.bf16.msra.mxu1 %v300_v20  ;;  %v411_v20 = vpack.c.bf16 %v407_v19, %v406_v18  ;;  %v544_v18 = vmul.f32 %v1875_v11, %v1974_v63 }
 0x132   :  { %1339 = vmatprep.subr.bf16.mxu1 %v1647_v4 }
 0x134   :  { %1318 = vmatmul.mubr.msk.bf16.vlgmr.msra.gmra.mrb[4].mxu1 %vm294_vm4, %v2006_v21 }
 0x135   :  { %1345 = vmatprep.mubr.msk.bf16.mxu1 %vm1648_vm0, %v1647_v4  ;;  %1340 = vmatpush3.bf16.msra.mxu1 %v464_v32  ;;  %v569_v32 = vld [vmem:[%s2403_s5 + $0x18] sm:$0xff] }
 0x136   :  { %1341 = vmatprep.subr.bf16.mxu1 %v1647_v4  ;;  %v574_v33 = vmul.f32 %v569_v32, %v1866_v3  ;;  %v968_v32 = vld [vmem:[%s2405_s13 + $0x38] sm:$0xff] }
 0x137   :  { %1058 = vst.msk [vmem:[%s1854_s6 + $0x38] sm:$0xff] %vm222_vm1, %v968_v32 }
 0x138   :  { %v2126_v37 = vadd.f32 %v579_v7, %v574_v33 }
 0x139   :  { %1342 = vmatpush3.bf16.msra.mxu1 %v465_v39  ;;  %v570_v39 = vld [vmem:[%s2403_s5 + $0x20] sm:$0xff] }
 0x13a   :  { %1343 = vmatprep.subr.bf16.mxu1 %v1647_v4  ;;  %v575_v40 = vmul.f32 %v570_v39, %v1866_v3  ;;  %626 = vst.msk [vmem:[%s2404_s9 + $0x18] sm:$0xff] %vm222_vm1, %v2126_v37  ;;  %v598_v39 = vmul.f32 %v1875_v11, %v2014_v22  ;;  %v593_v22 = vld [vmem:[%s2409_s3 + $0x18] sm:$0xff] }
 0x13d   :  { %1344 = vmatpush3.bf16.msra.mxu1 %v474_v41 }
 0x13e   :  { %1359 = vmatprep.subr.bf16.mxu1 %v1647_v4 }
 0x140   :  { %1346 = vmatmul.mubr.msk.bf16.vlgmr.msra.gmra.mrb[8].mxu1 %vm294_vm4, %v2006_v21 }
 0x141   :  { %1363 = vmatprep.mubr.msk.bf16.mxu1 %vm1648_vm0, %v1647_v4  ;;  %1360 = vmatpush3.bf16.msra.mxu1 %v685_v29  ;;  %v965_v29 = vld [vmem:[%s2405_s13 + $0x20] sm:$0xff] }
 0x142   :  { %1361 = vmatprep.subr.bf16.mxu1 %v1647_v4  ;;  %1055 = vst.msk [vmem:[%s1854_s6 + $0x20] sm:$0xff] %vm222_vm1, %v965_v29 }
 0x1fb   :  { %v260_v45 = vpop.f32.mrb[0].mxu1 }
 0x1fc   :  { %v2049_v49 = vadd.f32 %v260_v45, %v220_v44  ;;  %v1309_v50 = vpop.f32.mrb[1].mxu1  ;;  %v585_v44 = vadd.f32 %v580_v15, %v575_v40  ;;  %v599_v40 = vmul.f32 %v1875_v11, %v2017_v23 }
 0x1fd   :  { %v263_v51 = vpop.f32.mrb[2].mxu1 }
 0x1fe   :  { %v1310_v52 = vpop.f32.mrb[3].mxu1  ;;  %v266_v53 = vmul.f32 %v2049_v49, %v2049_v49  ;;  %627 = vst.msk [vmem:[%s2404_s9 + $0x20] sm:$0xff] %vm222_vm1, %v585_v44  ;;  %v745_v33 = vpack.c.bf16 %v585_v44, %v585_v44 }
 0x1ff   :  { %v961_v52 = vld [vmem:[%s2405_s13] sm:$0xff] }
 0x200   :  { %v267_v54 = vsel %vm222_vm1, %v266_v53, 0.0  ;;  %v962_v53 = vld [vmem:[%s2405_s13 + $0x8] sm:$0xff]  ;;  %1051 = vst.msk [vmem:[%s1854_s6] sm:$0xff] %vm222_vm1, %v961_v52  ;;  %v753_v15 = vsel %vm298_vm3, %v745_v33, 0 }
 0x201   :  { %268 = vadd.xlane.f32.xlu0 %v267_v54  ;;  %v974_v54 = vpack.c.bf16 %v962_v53, %v961_v52  ;;  %1052 = vst.msk [vmem:[%s1854_s6 + $0x8] sm:$0xff] %vm222_vm1, %v962_v53 }
 0x207   :  { %v336_v57 = vpop.f32.mrb[4].mxu1 }
 0x208   :  { %v337_v60 = vadd.f32 %v336_v57, %v292_v56  ;;  %v1319_v61 = vpop.f32.mrb[5].mxu1  ;;  %v963_v56 = vld [vmem:[%s2405_s13 + $0x10] sm:$0xff]  ;;  %v964_v57 = vld [vmem:[%s2405_s13 + $0x18] sm:$0xff] }
 0x209   :  { %v339_v2 = vpop.f32.mrb[6].mxu1  ;;  %1053 = vst.msk [vmem:[%s1854_s6 + $0x10] sm:$0xff] %vm222_vm1, %v963_v56  ;;  %1054 = vst.msk [vmem:[%s1854_s6 + $0x18] sm:$0xff] %vm222_vm1, %v964_v57  ;;  %v2153_v61 = vld [vmem:[%s2406_s17] sm:$0x1] }
 0x20a   :  { %v342_v5 = vmax.f32 %v337_v60, 0.0  ;;  %v1320_v8 = vpop.f32.mrb[7].mxu1  ;;  %v975_v60 = vpack.c.bf16 %v964_v57, %v963_v56  ;;  %v350_v0 = vrot.slane %v2153_v61, %v1971_v62 }
 0x20c   :  { %v343_v10 = vpack.c.bf16 %v342_v5, %v342_v5 }
 0x20e   :  { %1326 = vmatmul.mubr.msk.bf16.vlgmr.msra.gmra.mrb[4].mxu0 %vm222_vm1, %v343_v10 }
 0x20f   :  { %1330 = vmatpush3.bf16.msra.mxu0 %v409_v9  ;;  %1335 = vmatprep.mubr.msk.bf16.mxu0 %vm1648_vm0, %v1647_v4 }
 0x210   :  { %1331 = vmatprep.subr.bf16.mxu0 %v1647_v4 }
 0x213   :  { %1332 = vmatpush3.bf16.msra.mxu0 %v410_v17  ;;  %v510_v41 = vpop.f32.mrb[8].mxu1 }
 0x214   :  { %1333 = vmatprep.subr.bf16.mxu0 %v1647_v4  ;;  %v1347_v45 = vpop.f32.mrb[9].mxu1  ;;  %v511_v43 = vadd.f32 %v1239_v38, %v510_v41  ;;  %v591_v41 = vld [vmem:[%s2409_s3 + $0x8] sm:$0xff] }
 0x215   :  { %v513_v50 = vpop.f32.mrb[10].mxu1  ;;  %v595_v45 = vmul.f32 %v591_v41, %v1866_v3 }
 0x216   :  { %v1348_v51 = vpop.f32.mrb[11].mxu1  ;;  %v600_v50 = vmul.f32 %v1875_v11, %v2023_v25  ;;  %v597_v25 = vmul.f32 %v593_v22, %v1866_v3 }
 0x217   :  { %1334 = vmatpush3.bf16.msra.mxu0 %v411_v20  ;;  %v543_v20 = vmul.f32 %v542_v13, %v1866_v3  ;;  %v601_v51 = vmul.f32 %v1875_v11, %v2026_v26  ;;  %v603_v53 = vadd.f32 %v599_v40, %v595_v45  ;;  %v884_v13 = vld [vmem:[%s2410_s8 + $0x20] sm:$0xff] }
 0x218   :  { %1349 = vmatprep.subr.bf16.mxu0 %v1647_v4  ;;  %1071 = vst.msk [vmem:[%s1859_s27 + $0x20] sm:$0xff] %vm222_vm1, %v884_v13 }
 0x219   :  { %630 = vst.msk [vmem:[#allocation11 + $0x8] sm:$0xff] %vm222_vm1, %v603_v53  ;;  %v605_v57 = vadd.f32 %v601_v51, %v597_v25 }
 0x21a   :  { %1336 = vmatmul.mubr.msk.bf16.vlgmr.msra.gmra.mrb[8].mxu0 %vm168_vm2, %v1938_v46 }
 0x21b   :  { %1350 = vmatpush3.bf16.msra.mxu0 %v634_v24  ;;  %1355 = vmatprep.mubr.msk.bf16.mxu0 %vm1648_vm0, %v1647_v4  ;;  %632 = vst.msk [vmem:[#allocation11 + $0x18] sm:$0xff] %vm222_vm1, %v605_v57 }
 0x21c   :  { %1351 = vmatprep.subr.bf16.mxu0 %v1647_v4 }
 0x21f   :  { %1352 = vmatpush3.bf16.msra.mxu0 %v635_v27 }
 0x220   :  { %1353 = vmatprep.subr.bf16.mxu0 %v1647_v4 }
 0x223   :  { %1354 = vmatpush3.bf16.msra.mxu0 %v636_v28  ;;  %v2168_v28 = vadd.f32 %v544_v18, %v543_v20  ;;  %v885_v18 = vld [vmem:[%s2410_s8 + $0x28] sm:$0xff] }
 0x224   :  { %1377 = vmatprep.subr.bf16.mxu0 %v1647_v4  ;;  %1072 = vst.msk [vmem:[%s1859_s27 + $0x28] sm:$0xff] %vm222_vm1, %v885_v18 }
 0x225   :  { %v641_v35 = vrot.slane %v2168_v28, %v1971_v62  ;;  %617 = vst.msk [vmem:[#allocation4] sm:$0x1] %vm616_vm5, %v2168_v28 }
 0x226   :  { %1356 = vmatmul.mubr.msk.bf16.vlgmr.msra.gmra.mrb[12].mxu0 %vm168_vm2, %v1938_v46  ;;  %v686_v46 = vpack.c.bf16 %v1965_v59, %v1963_v58  ;;  %v743_v58 = vpack.c.bf16 %v2103_v31, %v2101_v30  ;;  %v568_v59 = vld [vmem:[%s2403_s5 + $0x10] sm:$0xff]  ;;  %v982_v30 = vsel %vm222_vm1, %v974_v54, 0  ;;  %v985_v31 = vsel %vm222_vm1, %v975_v60, 0 }
 0x227   :  { %1381 = vmatprep.mubr.msk.bf16.mxu0 %vm1648_vm0, %v1647_v4  ;;  %v573_v14 = vmul.f32 %v568_v59, %v1866_v3  ;;  %v967_v59 = vld [vmem:[%s2405_s13 + $0x30] sm:$0xff] }
 0x228   :  { %1362 = vmatpush3.bf16.msra.mxu1 %v686_v46  ;;  %1057 = vst.msk [vmem:[%s1854_s6 + $0x30] sm:$0xff] %vm222_vm1, %v967_v59  ;;  %v592_v54 = vld [vmem:[%s2409_s3 + $0x10] sm:$0xff]  ;;  %s1650_s6 = smov 64  }
 0x229   :  { %1367 = vmatprep.subr.bf16.mxu1 %v1647_v4  ;;  %v2124_v36 = vadd.f32 %v578_v6, %v573_v14  ;;  %v596_v56 = vmul.f32 %v592_v54, %v1866_v3 }
 0x22b   :  { %625 = vst.msk [vmem:[%s2404_s9 + $0x10] sm:$0xff] %vm222_vm1, %v2124_v36  ;;  %v744_v16 = vpack.c.bf16 %v2126_v37, %v2124_v36  ;;  %v604_v26 = vadd.f32 %v600_v50, %v596_v56 }
 0x22d   :  { %631 = vst.msk [vmem:[#allocation11 + $0x10] sm:$0xff] %vm222_vm1, %v604_v26  ;;  %v798_v60 = vpack.c.bf16 %v605_v57, %v604_v26 }
 0x2e1   :  { %v389_v1 = vpop.f32.mrb[4].mxu0 }
 0x2e2   :  { %v2157_v2 = vadd.f32 %v389_v1, %v350_v0  ;;  %v1327_v5 = vpop.f32.mrb[5].mxu0  ;;  %v880_v0 = vld [vmem:[%s2410_s8] sm:$0xff]  ;;  %v881_v1 = vld [vmem:[%s2410_s8 + $0x8] sm:$0xff] }
 0x2e3   :  { %v392_v8 = vpop.f32.mrb[6].mxu0  ;;  %v893_v5 = vpack.c.bf16 %v881_v1, %v880_v0  ;;  %1067 = vst.msk [vmem:[%s1859_s27] sm:$0xff] %vm222_vm1, %v880_v0  ;;  %1068 = vst.msk [vmem:[%s1859_s27 + $0x8] sm:$0xff] %vm222_vm1, %v881_v1  ;;  %v608_v1 = vmul.f32 %v1875_v11, %v2153_v61 }
 0x2e4   :  { %v1328_v9 = vpop.f32.mrb[7].mxu0  ;;  %v395_v10 = vmul.f32 %v2157_v2, %v2157_v2  ;;  %v882_v8 = vld [vmem:[%s2410_s8 + $0x10] sm:$0xff] }
 0x2e5   :  { %v883_v9 = vld [vmem:[%s2410_s8 + $0x18] sm:$0xff]  ;;  %1069 = vst.msk [vmem:[%s1859_s27 + $0x10] sm:$0xff] %vm222_vm1, %v882_v8 }
 0x2e6   :  { %v396_v12 = vsel %vm222_vm1, %v395_v10, 0.0  ;;  %v894_v10 = vpack.c.bf16 %v883_v9, %v882_v8  ;;  %1070 = vst.msk [vmem:[%s1859_s27 + $0x18] sm:$0xff] %vm222_vm1, %v883_v9 }
 0x2e7   :  { %397 = vadd.xlane.f32.xlu0 %v396_v12  ;;  %v269_v12 = vpop.xlane.xlu0 %268 }
 0x2e8   :  { %v904_v45 = vsel %vm222_vm1, %v894_v10, 0  ;;  %v270_v50 = vmax.f32 %v269_v12, 1e-24 }
 0x2ed   :  { %v2163_v17 = vpop.f32.mrb[8].mxu0 }
 0x2ee   :  { %v1337_v19 = vpop.f32.mrb[9].mxu0 }
 0x2ef   :  { %v455_v24 = vpop.f32.mrb[10].mxu0  ;;  %v895_v19 = vpack.c.bf16 %v885_v18, %v884_v13 }
 0x2f0   :  { %v1338_v27 = vpop.f32.mrb[11].mxu0 }
 0x2f1   :  { %v886_v27 = vld [vmem:[%s2410_s8 + $0x30] sm:$0xff]  ;;  %v907_v51 = vsel %vm222_vm1, %v895_v19, 0 }
 0x2f2   :  { %1073 = vst.msk [vmem:[%s1859_s27 + $0x30] sm:$0xff] %vm222_vm1, %v886_v27 }
 0x2f9   :  { %v677_v63 = vpop.f32.mrb[12].mxu0 }
 0x2fa   :  { %v678_v46 = vadd.f32 %v677_v63, %v641_v35  ;;  %v1357_v47 = vpop.f32.mrb[13].mxu0 }
 0x2fb   :  { %v680_v48 = vpop.f32.mrb[14].mxu0 }
 0x2fc   :  { %v683_v6 = vmax.f32 %v678_v46, 0.0  ;;  %v1358_v7 = vpop.f32.mrb[15].mxu0  ;;  %v564_v46 = vmul.f32 %v1875_v11, %v2045_v42 }
 0x2fd   :  { %856 = vrot.lane.b32.xlu0 %v511_v43, %s1649_s29  ;;  %v562_v43 = vld [vmem:[%s2411_s14] sm:$0x1] }
 0x2fe   :  { %v684_v14 = vpack.c.bf16 %v683_v6, %v683_v6  ;;  %v563_v47 = vmul.f32 %v562_v43, %v1866_v3  ;;  %v586_v7 = vld [vmem:[%s2412_s19] sm:$0x1] }
 0x2ff   :  { %v587_v33 = vmul.f32 %v586_v7, %v1866_v3 }
 0x300   :  { %1364 = vmatmul.mubr.msk.bf16.vlgmr.msra.gmra.mrb[12].mxu1 %vm222_vm1, %v684_v14  ;;  %v2263_v48 = vadd.f32 %v564_v46, %v563_v47 }
 0x301   :  { %1368 = vmatpush3.bf16.msra.mxu1 %v743_v58  ;;  %1373 = vmatprep.mubr.msk.bf16.mxu1 %vm1648_vm0, %v1647_v4  ;;  %v976_v58 = vpack.c.bf16 %v966_v34, %v965_v29  ;;  %v887_v29 = vld [vmem:[%s2410_s8 + $0x38] sm:$0xff] }
 0x302   :  { %1369 = vmatprep.subr.bf16.mxu1 %v1647_v4  ;;  %v896_v34 = vpack.c.bf16 %v887_v29, %v886_v27  ;;  %1074 = vst.msk [vmem:[%s1859_s27 + $0x38] sm:$0xff] %vm222_vm1, %v887_v29  ;;  %v691_v6 = vrot.slane %v2263_v48, %v1971_v62  ;;  %s1469_s27 = scalar_lea.vmem %s1103_s26, 512 }
 0x303   :  { %v988_v36 = vsel %vm222_vm1, %v976_v58, 0  ;;  %622 = vst.msk [vmem:[#allocation8] sm:$0x1] %vm616_vm5, %v2263_v48  ;;  %p1470_p1 = scmp.ne.s32.totalorder %s1103_s26, %s1469_s27  ;;  %p1475_p3 = scmp.lt.s32.totalorder %s1469_s27, %s1469_s27 }
 0x305   :  { %1370 = vmatpush3.bf16.msra.mxu1 %v744_v16  ;;  %v590_v16 = vld [vmem:[%s2409_s3] sm:$0xff]  ;;  %p1476_p4 = por %p1475_p3, %p1474_p2 }
 0x306   :  { %1371 = vmatprep.subr.bf16.mxu1 %v1647_v4  ;;  %v594_v44 = vmul.f32 %v590_v16, %v1866_v3 }
 0x307   :  { %p1477_p5 = pnand %p1476_p4, %p1470_p1 }
 0x308   :  { %v602_v52 = vadd.f32 %v598_v39, %v594_v44  ;;  %v901_v44 = vsel %vm222_vm1, %v893_v5, 0 }
 0x309   :  { %1372 = vmatpush3.bf16.msra.mxu1 %v753_v15 }
 0x30a   :  { %1397 = vmatprep.subr.bf16.mxu1 %v1647_v4  ;;  %629 = vst.msk [vmem:[#allocation11] sm:$0xff] %vm222_vm1, %v602_v52  ;;  %v797_v23 = vpack.c.bf16 %v603_v53, %v602_v52  ;;  %v910_v52 = vsel %vm222_vm1, %v896_v34, 0 }
 0x30c   :  { %1374 = vmatmul.mubr.msk.bf16.vlgmr.msra.gmra.mrb[16].mxu1 %vm294_vm4, %v2006_v21  ;;  %v977_v21 = vpack.c.bf16 %v968_v32, %v967_v59  ;;  %1378 = vmatpush3.bf16.msra.mxu0 %v797_v23 }
 0x30d   :  { %1405 = vmatprep.mubr.msk.bf16.mxu1 %vm1648_vm0, %v1647_v4  ;;  %1379 = vmatprep.subr.bf16.mxu0 %v1647_v4 }
 0x30e   :  { %v991_v37 = vsel %vm222_vm1, %v977_v21, 0 }
 0x310   :  { %1380 = vmatpush3.bf16.msra.mxu0 %v798_v60 }
 0x311   :  { %1385 = vmatprep.subr.bf16.mxu0 %v1647_v4 }
 0x312   :  { %1398 = vmatpush3.bf16.xpose.msra.mxu1 %v982_v30 }
 0x313   :  { %1399 = vmatprep.subr.bf16.mxu1 %v1647_v4 }
 0x31a   :  { %1400 = vmatpush3.bf16.xpose.msra.mxu1 %v985_v31 }
 0x31b   :  { %1401 = vmatprep.subr.bf16.mxu1 %v1647_v4 }
 0x322   :  { %1402 = vmatpush3.bf16.xpose.msra.mxu1 %v988_v36 }
 0x323   :  { %1403 = vmatprep.subr.bf16.mxu1 %v1647_v4 }
 0x32a   :  { %1404 = vmatpush3.bf16.xpose.msra.mxu1 %v991_v37 }
 0x374   :  { %v398_v20 = vpop.xlane.xlu0 %397 }
 0x375   :  { %v399_v24 = vmax.f32 %v398_v20, 1e-24 }
 0x377   :  { %1461 = vrsqrt.f32 %v399_v24 }
 0x378   :  { %1463 = vrsqrt.f32 %v270_v50 }
 0x381   :  { %v1462_v35 = vpop.eup %1461 }
 0x382   :  { %v2254_v38 = vmul.f32 %v1462_v35, %v2157_v2  ;;  %v588_v2 = vmul.f32 %v1875_v11, %v2055_v55  ;;  %v1464_v53 = vpop.eup %1463 }
 0x383   :  { %v272_v54 = vmul.f32 %v1464_v53, %v2049_v49  ;;  %v606_v49 = vld [vmem:[%s2414_s12] sm:$0x1] }
 0x384   :  { %v973_v63 = vpack.c.bf16 %v2254_v38, %v2254_v38  ;;  %v2272_v58 = vadd.f32 %v588_v2, %v587_v33  ;;  %v607_v5 = vmul.f32 %v606_v49, %v1866_v3 }
 0x385   :  { %v892_v22 = vpack.c.bf16 %v272_v54, %v272_v54 }
 0x386   :  { %1406 = vmatmul.mubr.msk.bf16.vlgmr.msra.gmra.mrb[20].mxu1 %vm222_vm1, %v973_v63  ;;  %v750_v36 = vrot.slane %v2272_v58, %v1971_v62  ;;  %v609_v8 = vadd.f32 %v608_v1, %v607_v5  ;;  %628 = vst.msk [vmem:[#allocation9] sm:$0x1] %vm616_vm5, %v2272_v58 }
 0x388   :  { %v803_v9 = vrot.slane %v609_v8, %v1971_v62  ;;  %633 = vst.msk [vmem:[#allocation12] sm:$0x1] %vm616_vm5, %v609_v8 }
 0x3d3   :  { %v730_v59 = vpop.f32.mrb[12].mxu1 }
 0x3d4   :  { %v731_v32 = vadd.f32 %v730_v59, %v691_v6  ;;  %v1365_v14 = vpop.f32.mrb[13].mxu1 }
 0x3d5   :  { %v733_v15 = vpop.f32.mrb[14].mxu1 }
 0x3d6   :  { %v1366_v30 = vpop.f32.mrb[15].mxu1  ;;  %v736_v31 = vmul.f32 %v731_v32, %v731_v32 }
 0x3d8   :  { %v737_v42 = vsel %vm222_vm1, %v736_v31, 0.0 }
 0x3d9   :  { %738 = vadd.xlane.f32.xlu1 %v737_v42 }
 0x3df   :  { %v789_v21 = vpop.f32.mrb[16].mxu1 }
 0x3e0   :  { %v790_v37 = vadd.f32 %v789_v21, %v750_v36  ;;  %v1375_v39 = vpop.f32.mrb[17].mxu1 }
 0x3e1   :  { %v792_v40 = vpop.f32.mrb[18].mxu1 }
 0x3e2   :  { %v795_v55 = vmax.f32 %v790_v37, 0.0  ;;  %v1376_v16 = vpop.f32.mrb[19].mxu1 }
 0x3e4   :  { %v796_v41 = vpack.c.bf16 %v795_v55, %v795_v55 }
 0x3e6   :  { %1382 = vmatmul.mubr.msk.bf16.vlgmr.msra.gmra.mrb[16].mxu0 %vm222_vm1, %v796_v41 }
 0x3e7   :  { %1386 = vmatpush3.bf16.xpose.msra.mxu0 %v901_v44  ;;  %1393 = vmatprep.mubr.msk.bf16.mxu0 %vm1648_vm0, %v1647_v4 }
 0x3e8   :  { %1387 = vmatprep.subr.bf16.mxu0 %v1647_v4 }
 0x3ef   :  { %1388 = vmatpush3.bf16.xpose.msra.mxu0 %v904_v45 }
 0x3f0   :  { %1389 = vmatprep.subr.bf16.mxu0 %v1647_v4 }
 0x3f7   :  { %1390 = vmatpush3.bf16.xpose.msra.mxu0 %v907_v51 }
 0x3f8   :  { %1391 = vmatprep.subr.bf16.mxu0 %v1647_v4 }
 0x3ff   :  { %1392 = vmatpush3.bf16.xpose.msra.mxu0 %v910_v52 }
 0x406   :  { %1394 = vmatmul.mubr.msk.bf16.vlgmr.msra.gmra.mrb[20].mxu0 %vm222_vm1, %v892_v22 }
 0x459   :  { %v2288_v23 = vpop.f32.mrb[20].mxu1 }
 0x45a   :  { %v1407_v56 = vpop.f32.mrb[21].mxu1 }
 0x45b   :  { %v1030_v25 = vpop.f32.mrb[22].mxu1 }
 0x45c   :  { %v1408_v26 = vpop.f32.mrb[23].mxu1 }
 0x466   :  { %v739_v57 = vpop.xlane.xlu1 %738 }
 0x467   :  { %v740_v60 = vmax.f32 %v739_v57, 1e-24 }
 0x469   :  { %1465 = vrsqrt.f32 %v740_v60 }
 0x473   :  { %v1466_v4 = vpop.eup %1465 }
 0x474   :  { %v2296_v0 = vmul.f32 %v1466_v4, %v731_v32 }
 0x476   :  { %1076 = vst.msk [vmem:[%s1075_s4] sm:$0xff] %vm222_vm1, %v2296_v0  ;;  %v969_v27 = vmul.f32 %v2296_v0, %v2254_v38 }
 0x478   :  { %v970_v11 = vsel %vm222_vm1, %v969_v27, 0.0 }
 0x4b9   :  { %v842_v10 = vpop.f32.mrb[16].mxu0 }
 0x4ba   :  { %v843_v12 = vadd.f32 %v842_v10, %v803_v9  ;;  %v1383_v13 = vpop.f32.mrb[17].mxu0 }
 0x4bb   :  { %v845_v18 = vpop.f32.mrb[18].mxu0 }
 0x4bc   :  { %v1384_v19 = vpop.f32.mrb[19].mxu0  ;;  %v848_v20 = vmul.f32 %v843_v12, %v843_v12 }
 0x4be   :  { %v849_v24 = vsel %vm222_vm1, %v848_v20, 0.0 }
 0x4bf   :  { %850 = vadd.xlane.f32.xlu1 %v849_v24 }
 0x4c3   :  { %971 = vadd.xlane.f32.xlu1 %v970_v11 }
 0x4d4   :  { %860 = vrot.lane.b32.xlu1 %v272_v54, %s1650_s6 }
 0x4d9   :  { %v946_v3 = vpop.f32.mrb[20].mxu0 }
 0x4da   :  { %953 = vrot.lane.b32.xlu1 %v946_v3, %s1651_s16  ;;  %v1395_v62 = vpop.f32.mrb[21].mxu0 }
 0x4db   :  { %v949_v61 = vpop.f32.mrb[22].mxu0 }
 0x4dc   :  { %v1396_v29 = vpop.f32.mrb[23].mxu0 }
 0x54c   :  { %v851_v34 = vpop.xlane.xlu1 %850 }
 0x54d   :  { %v852_v35 = vmax.f32 %v851_v34, 1e-24 }
 0x54f   :  { %1467 = vrsqrt.f32 %v852_v35 }
 0x559   :  { %v1468_v63 = vpop.eup %1467 }
 0x55a   :  { %v854_v43 = vmul.f32 %v1468_v63, %v843_v12 }
 0x55c   :  { %1078 = vst.msk [vmem:[%s1077_s18] sm:$0xff] %vm222_vm1, %v854_v43  ;;  %868 = vrot.lane.b32.xlu1 %v854_v43, %s1649_s29  ;;  %v888_v46 = vmul.f32 %v854_v43, %v272_v54 }
 0x55e   :  { %v889_v47 = vsel %vm222_vm1, %v888_v46, 0.0 }
 0x55f   :  { %890 = vadd.xlane.f32.xlu0 %v889_v47 }
 0x560   :  { %864 = vrot.lane.b32.xlu1 %v2254_v38, %s1652_s22 }
 0x561   :  { %1480 = shalt.err (!%p1477_p5)
}
 0x562   :  { %s2415_s2 = sld [smem:[#allocation35_spill]] }
 0x568   :  { %s1481_s7 = scalar_lea.hbm %s2415_s2, 512 }
 0x569   :  { %p1482_p6 = scmp.ne.s32.totalorder %s2415_s2, %s1481_s7  ;;  %p1485_p7 = scmp.lt.u32.totalorder %s1481_s7, %s2415_s2 }
 0x56b   :  { %p1487_p8 = pnand %p1485_p7, %p1482_p6 }
 0x56d   :  { %1490 = shalt.err (!%p1487_p8)
}
 0x56e   :  { %s1655_s10 = smov 128   ;;  %s1656_s11 = smov 8  }
 0x56f   :  { %1108 = dma.vmem_to_hbm [thread:$0]  %s1103_s26, 512, %s2415_s2, [#allocation7], %s1655_s10, %s1655_s10, %s1656_s11  }
 0x570   :  { %s1491_s15 = scalar_lea.vmem %s2319_s1, 16  ;;  %s1495_s0 = scalar_lea.vmem %s2319_s1, 32 }
 0x571   :  { %p1492_p9 = scmp.ne.s32.totalorder %s2319_s1, %s1491_s15  ;;  %p1496_p10 = scmp.lt.s32.totalorder %s2319_s1, %s2319_s1 }
 0x572   :  { %p1497_p11 = scmp.lt.s32.totalorder %s1495_s0, %s1491_s15 }
 0x574   :  { %p1498_p12 = por %p1497_p11, %p1496_p10 }
 0x575   :  { %1034 = vrot.lane.b32.xlu0 %v2288_v23, %s1651_s16 }
 0x576   :  { %p1499_p13 = pnand %p1498_p12, %p1492_p9 }
 0x578   :  { %1502 = shalt.err (!%p1499_p13)
}
 0x579   :  { %s2416_s5 = sld [smem:[#allocation38_spill]] }
 0x57f   :  { %s1503_s9 = scalar_lea.hbm %s2416_s5, 16 }
 0x580   :  { %p1504_p0 = scmp.ne.s32.totalorder %s2416_s5, %s1503_s9  ;;  %p1507_p1 = scmp.lt.u32.totalorder %s1503_s9, %s2416_s5 }
 0x582   :  { %p1509_p2 = pnand %p1507_p1, %p1504_p0 }
 0x584   :  { %1512 = shalt.err (!%p1509_p2)
}
 0x585   :  { %1130 = dma.vmem_to_hbm [thread:$0]  %s2319_s1, 16, %s2416_s5, [#allocation10]  }
 0x586   :  { %s1657_s13 = smov [#allocation4]   ;;  %s1658_s21 = smov [#allocation8]  }
 0x587   :  { %s1093_s17 = sshll.u32 %s1657_s13, 4  ;;  %s1115_s25 = sshll.u32 %s1658_s21, 4  ;;  %s1094_s17 = int_to_ptr.vmem [resolvable:$true] %s1093_s17  ;;  %s1116_s25 = int_to_ptr.vmem [resolvable:$true] %s1115_s25 }
 0x588   :  { %s1513_s29 = scalar_lea.vmem %s1094_s17, 16  ;;  %s1517_s3 = scalar_lea.vmem %s1094_s17, 32 }
 0x589   :  { %p1514_p3 = scmp.ne.s32.totalorder %s1094_s17, %s1513_s29  ;;  %p1518_p4 = scmp.lt.s32.totalorder %s1094_s17, %s1094_s17 }
 0x58a   :  { %p1519_p5 = scmp.lt.s32.totalorder %s1517_s3, %s1513_s29 }
 0x58c   :  { %p1520_p6 = por %p1519_p5, %p1518_p4 }
 0x58e   :  { %p1521_p7 = pnand %p1520_p6, %p1514_p3 }
 0x590   :  { %1524 = shalt.err (!%p1521_p7)
}
 0x591   :  { %s2417_s8 = sld [smem:[#allocation34_spill]] }
 0x597   :  { %s1525_s14 = scalar_lea.hbm %s2417_s8, 16 }
 0x598   :  { %p1526_p8 = scmp.ne.s32.totalorder %s2417_s8, %s1525_s14  ;;  %p1529_p9 = scmp.lt.u32.totalorder %s1525_s14, %s2417_s8 }
 0x59a   :  { %p1531_p10 = pnand %p1529_p9, %p1526_p8 }
 0x59c   :  { %1534 = shalt.err (!%p1531_p10)
}
 0x59d   :  { %1096 = dma.vmem_to_hbm [thread:$0]  %s1094_s17, 16, %s2417_s8, [#allocation5]  }
 0x59e   :  { %s1535_s19 = scalar_lea.vmem %s1116_s25, 16  ;;  %s1539_s30 = scalar_lea.vmem %s1116_s25, 32 }
 0x59f   :  { %p1536_p11 = scmp.ne.s32.totalorder %s1116_s25, %s1535_s19  ;;  %p1540_p12 = scmp.lt.s32.totalorder %s1116_s25, %s1116_s25 }
 0x5a0   :  { %p1541_p13 = scmp.lt.s32.totalorder %s1539_s30, %s1535_s19 }
 0x5a2   :  { %p1542_p0 = por %p1541_p13, %p1540_p12 }
 0x5a4   :  { %p1543_p1 = pnand %p1542_p0, %p1536_p11 }
 0x5a6   :  { %1546 = shalt.err (!%p1543_p1)
}
 0x5a7   :  { %s2418_s12 = sld [smem:[#allocation36_spill]] }
 0x5ad   :  { %s1547_s4 = scalar_lea.hbm %s2418_s12, 16 }
 0x5ae   :  { %p1548_p2 = scmp.ne.s32.totalorder %s2418_s12, %s1547_s4  ;;  %p1551_p3 = scmp.lt.u32.totalorder %s1547_s4, %s2418_s12 }
 0x5b0   :  { %p1553_p4 = pnand %p1551_p3, %p1548_p2 }
 0x5b2   :  { %1556 = shalt.err (!%p1553_p4)
}
 0x5b3   :  { %1118 = dma.vmem_to_hbm [thread:$0]  %s1116_s25, 16, %s2418_s12, [#allocation7]  }
 0x5b4   :  { %s1659_s6 = smov [#allocation11]   ;;  %s1660_s18 = smov [#allocation12]  }
 0x5b5   :  { %s1136_s16 = sshll.u32 %s1659_s6, 4  ;;  %s1149_s22 = sshll.u32 %s1660_s18, 4  ;;  %s1137_s16 = int_to_ptr.vmem [resolvable:$true] %s1136_s16  ;;  %s1150_s22 = int_to_ptr.vmem [resolvable:$true] %s1149_s22 }
 0x5b6   :  { %s1557_s23 = scalar_lea.vmem %s1137_s16, 512  ;;  %p1562_p6 = scmp.lt.s32.totalorder %s1137_s16, %s1137_s16 }
 0x5b7   :  { %p1558_p5 = scmp.ne.s32.totalorder %s1137_s16, %s1557_s23  ;;  %p1563_p7 = scmp.lt.s32.totalorder %s1557_s23, %s1557_s23 }
 0x5b9   :  { %p1564_p8 = por %p1563_p7, %p1562_p6 }
 0x5bb   :  { %p1565_p9 = pnand %p1564_p8, %p1558_p5 }
 0x5bd   :  { %1568 = shalt.err (!%p1565_p9)
}
 0x5be   :  { %s1569_s26 = scalar_lea.hbm %s1844_s20, 512 }
 0x5bf   :  { %p1570_p10 = scmp.ne.s32.totalorder %s1844_s20, %s1569_s26  ;;  %p1573_p11 = scmp.lt.u32.totalorder %s1569_s26, %s1844_s20 }
 0x5c1   :  { %p1575_p12 = pnand %p1573_p11, %p1570_p10 }
 0x5c3   :  { %1578 = shalt.err (!%p1575_p12)
}
 0x5c4   :  { %1142 = dma.vmem_to_hbm [thread:$0]  %s1137_s16, 512, %s1844_s20, [#allocation10], %s1655_s10, %s1655_s10, %s1656_s11  }
 0x5c5   :  { %s1579_s28 = scalar_lea.vmem %s1150_s22, 16  ;;  %s1583_s1 = scalar_lea.vmem %s1150_s22, 32 }
 0x5c6   :  { %p1580_p13 = scmp.ne.s32.totalorder %s1150_s22, %s1579_s28  ;;  %p1584_p0 = scmp.lt.s32.totalorder %s1150_s22, %s1150_s22 }
 0x5c7   :  { %p1585_p1 = scmp.lt.s32.totalorder %s1583_s1, %s1579_s28 }
 0x5c9   :  { %p1586_p2 = por %p1585_p1, %p1584_p0 }
 0x5cb   :  { %p1587_p3 = pnand %p1586_p2, %p1580_p13 }
 0x5cd   :  { %1590 = shalt.err (!%p1587_p3)
}
 0x5ce   :  { %s1591_s27 = scalar_lea.hbm %s1849_s24, 16 }
 0x5cf   :  { %p1592_p4 = scmp.ne.s32.totalorder %s1849_s24, %s1591_s27  ;;  %p1595_p5 = scmp.lt.u32.totalorder %s1591_s27, %s1849_s24 }
 0x5d1   :  { %p1597_p6 = pnand %p1595_p5, %p1592_p4 }
 0x5d3   :  { %1600 = shalt.err (!%p1597_p6)
}
 0x5d4   :  { %s2419_s2 = sld [smem:[#allocation27_spill]]  ;;  %s2420_s7 = sld [smem:[#allocation31_spill]]  ;;  %v972_v28 = vpop.xlane.xlu1 %971  ;;  %v857_v7 = vpop.permute.xlu0 %856  ;;  %vm872_vm6 = vcmask 523264   ;;  %vm874_vm7 = vcmask 785408   ;;  %vm956_vm8 = vcmask 7168   ;;  %vm958_vm9 = vcmask 531456  }
 0x5d5   :  { %1152 = dma.vmem_to_hbm [thread:$0]  %s1150_s22, 16, %s1849_s24, [#allocation13]  }
 0x5d6   :  { %s2421_s20 = sld [smem:[#allocation32_spill]]  ;;  %s2422_s10 = sld [smem:[#allocation33_spill]] }
 0x5d8   :  { %v861_v38 = vpop.permute.xlu1 %860 }
 0x5da   :  { %v1237_v6 = vld [vmem:[%s2419_s2] ss:$0 sm:$0xff] }
 0x5db   :  { %v453_v2 = vadd.f32 %v1237_v6, %v2163_v17 }
 0x5dc   :  { %v954_v48 = vpop.permute.xlu1 %953 }
 0x5dd   :  { %v871_v33 = vsel %vm222_vm1, %v453_v2, %v857_v7 }
 0x5de   :  { %v873_v15 = vsel %vm872_vm6, %v871_v33, %v861_v38 }
 0x5e0   :  { %v869_v59 = vpop.permute.xlu1 %868 }
 0x5e1   :  { %v876_v32 = vsel %vm222_vm1, %v2296_v0, %v869_v59 }
 0x5e2   :  { %v877_v14 = vsel %vm872_vm6, %v876_v32, 0.0 }
 0x5e3   :  { %879 = vst [vmem:[%s2420_s7 + $0x8] sm:$0xff] %v877_v14 }
 0x5e4   :  { %v865_v30 = vpop.permute.xlu1 %864 }
 0x5e5   :  { %v875_v31 = vsel %vm874_vm7, %v873_v15, %v865_v30 }
 0x5e6   :  { %878 = vst [vmem:[%s2420_s7] sm:$0xff] %v875_v31 }
 0x5ec   :  { %v891_v42 = vpop.xlane.xlu0 %890 }
 0x5ed   :  { %v957_v58 = vsel %vm956_vm8, %v891_v42, %v954_v48 }
 0x5ee   :  { %v959_v17 = vsel %vm958_vm9, %v957_v58, 0.0 }
 0x5ef   :  { %960 = vst [vmem:[%s2421_s20] sm:$0xff] %v959_v17 }
 0x5f0   :  { %v1035_v36 = vpop.permute.xlu0 %1034 }
 0x5f1   :  { %v1037_v21 = vsel %vm956_vm8, %v972_v28, %v1035_v36 }
 0x5f2   :  { %v1038_v37 = vsel %vm958_vm9, %v1037_v21, 0.0 }
 0x5f3   :  { %1039 = vst [vmem:[%s2422_s10] sm:$0xff] %v1038_v37 }
 0x5f4   :  { %1601 = dma.done.wait [#allocation5], 16  }
 0x5f5   :  { %1602 = vsyncadd [#allocation5], 4294967280 }
 0x5f6   :  { %1603 = dma.done.wait [#allocation7], 528  }
 0x5f7   :  { %1604 = vsyncadd [#allocation7], 4294966768 }
 0x5f8   :  { %1605 = dma.done.wait [#allocation10], 528  }
 0x5f9   :  { %1606 = vsyncadd [#allocation10], 4294966768 }
 0x5fa   :  { %1607 = dma.done.wait [#allocation13], 16  }
 0x5fb   :  { %1608 = vsyncadd [#allocation13], 4294967280 }
 0x5fc   :  { %1189 = vsyncpa [#allocation5], 1 }
 0x5fd   :  { %1190 = vsyncpa [#allocation7], 1 }
 0x5fe   :  { %1191 = vsyncpa [#allocation10], 1 }
 0x5ff   :  { %1192 = vsyncpa [#allocation13], 1 }

</bundles_post_ra>
